<compile_context>
chip_gen: v7x
topology: tpu7x:2x2x1
jax: 0.10.0
libtpu: 0.0.40
codegen_flags: <defaults>
</compile_context>

<pallas_src>
import functools
import math

import jax
import jax.numpy as jnp
from jax.experimental import pallas as pl
from jax.experimental.pallas import tpu as pltpu


def _mha_fused_kernel(q_ref, k_ref, v_ref,
                      wq_ref, bq_ref, wk_ref, bk_ref, wv_ref, bv_ref,
                      wo_ref, bo_ref, o_ref, *, num_heads, compute_dtype):
    """Fused per-batch-block kernel: QKV projections + attention + output projection.

    q_ref: (B_BLK, H*Tq, d_k)   head-major rows (row = h*Tq + t) per batch
    k_ref/v_ref: (B_BLK, H*T, d_k)
    wq/wk/wv: (d_k, d_k) pre-transposed to (in, out); wq/bq carry the 1/sqrt(d_k) scale
    biases: (1, d_k)
    wo_ref: (H*d_k, d_model) pre-transposed output projection; bo_ref: (1, d_model)
    o_ref: (B_BLK, Tq, d_model)
    """
    B = q_ref.shape[0]
    H = num_heads
    d_k = q_ref.shape[2]
    Tq = q_ref.shape[1] // H
    T = k_ref.shape[1] // H
    d_model = o_ref.shape[2]
    cd = compute_dtype

    # Fold batch into the matmul rows (leading-dim reshape: free, no relayout).
    q2 = q_ref[...].reshape(B * H * Tq, d_k).astype(cd)
    k2 = k_ref[...].reshape(B * H * T, d_k).astype(cd)
    v2 = v_ref[...].reshape(B * H * T, d_k).astype(cd)

    # QKV projections: one wide-row MXU matmul each (bf16 operands, f32 accumulate).
    # The 1/sqrt(d_k) scale is already folded into wq/bq by the wrapper.
    qp = jnp.dot(q2, wq_ref[...].astype(cd),
                 preferred_element_type=jnp.float32) + bq_ref[...]
    kp = jnp.dot(k2, wk_ref[...].astype(cd),
                 preferred_element_type=jnp.float32) + bk_ref[...]
    vp = jnp.dot(v2, wv_ref[...].astype(cd),
                 preferred_element_type=jnp.float32) + bv_ref[...]

    # Head-major batched views (leading-dim split: free).
    qh = qp.reshape(B * H, Tq, d_k).astype(cd)
    kh = kp.reshape(B * H, T, d_k).astype(cd)
    vh = vp.reshape(B * H, T, d_k)

    # Scores, batched over (batch, head); contraction on the last dims (no explicit .T).
    # NOTE: lane-sparse when T < 128; fills the lane axis at production sequence lengths.
    s = jnp.einsum('bqd,bkd->bqk', qh, kh,
                   preferred_element_type=jnp.float32)                 # (B*H, Tq, T)

    # Numerically-stable softmax along keys; f32 math, exact division for parity.
    s = s - jnp.max(s, axis=-1, keepdims=True)
    e = jnp.exp(s)
    p = e / jnp.sum(e, axis=-1, keepdims=True)

    # Attention-weighted values, (B*H, Tq, d_k).
    av = jnp.einsum('bqk,bkd->bqd', p.astype(cd), vh.astype(cd),
                    preferred_element_type=jnp.float32)

    # Output projection as ONE matmul with an H*d_k-deep contraction.
    # Lane-concatenate the per-head (Tq, d_k) tiles into the concat-heads slab
    # (d_k = lane width -> pure vreg placement), then a single MXU matmul + bias.
    av4 = av.reshape(B, H, Tq, d_k)
    cat = jnp.concatenate([av4[:, h] for h in range(H)], axis=-1)      # (B, Tq, H*d_k)
    cat2 = cat.reshape(B * Tq, H * d_k).astype(cd)
    out = jnp.dot(cat2, wo_ref[...].astype(cd),
                  preferred_element_type=jnp.float32) + bo_ref[...]    # (B*Tq, d_model)
    o_ref[...] = out.reshape(B, Tq, d_model).astype(o_ref.dtype)


def _pick_batch_block(bs, rows_per_batch, target_rows=256, min_grid=2):
    """Largest batch block that divides bs, keeps >= min_grid grid steps when the batch
    allows it (v7x: 2 TensorCores), and stops growing once the MXU row target is met."""
    best = 1
    for b in range(1, bs + 1):
        if bs % b:
            continue
        if bs >= min_grid and bs // b < min_grid:
            break            # larger blocks would collapse the parallel grid
        best = b
        if b * rows_per_batch >= target_rows:
            break            # MXU rows filled; bigger blocks only cost VMEM
    return best


def multi_head_attention(query, key, value, params, num_heads, *,
                         compute_dtype=jnp.bfloat16):
    """Pallas forward pass matching the PyTorch module semantics (mask=None).

    compute_dtype: dtype of the MXU operands (accumulation is always f32).
      jnp.bfloat16 (default) for throughput, jnp.float32 for exact parity.
    """
    bs, Tq, E = query.shape
    _, T, _ = key.shape
    d_k = E // num_heads
    d_model = params["wo"].shape[0]
    scale = 1.0 / math.sqrt(float(d_k))

    # Layout plumbing in plain JAX (outside the kernel): split heads and go head-major
    # so the kernel sees lane-dense (H*T, d_k) slabs and never transposes activations.
    def to_head_major(x, t):
        return (x.reshape(bs, t, num_heads, d_k)
                 .transpose(0, 2, 1, 3)
                 .reshape(bs, num_heads * t, d_k))

    qf = to_head_major(query, Tq)
    kf = to_head_major(key, T)
    vf = to_head_major(value, T)

    # PyTorch Linear weights are (out, in): pre-transpose to (in, out).
    # Fold the 1/sqrt(d_k) attention scale into the Q projection (exact, trace-time).
    wq_t = params["wq"].T * scale
    bq = (params["bq"] * scale).reshape(1, d_k)
    wk_t = params["wk"].T
    bk = params["bk"].reshape(1, d_k)
    wv_t = params["wv"].T
    bv = params["bv"].reshape(1, d_k)
    wo_t = params["wo"].T                          # (H*d_k, d_model)
    bo = params["bo"].reshape(1, d_model)

    b_blk = _pick_batch_block(bs, num_heads * Tq)
    grid = (bs // b_blk,)

    kernel = functools.partial(_mha_fused_kernel, num_heads=num_heads,
                               compute_dtype=compute_dtype)

    out = pl.pallas_call(
        kernel,
        out_shape=jax.ShapeDtypeStruct((bs, Tq, d_model), query.dtype),
        grid_spec=pltpu.PrefetchScalarGridSpec(
            num_scalar_prefetch=0,
            grid=grid,
            in_specs=[
                pl.BlockSpec((b_blk, num_heads * Tq, d_k), lambda b: (b, 0, 0)),
                pl.BlockSpec((b_blk, num_heads * T, d_k), lambda b: (b, 0, 0)),
                pl.BlockSpec((b_blk, num_heads * T, d_k), lambda b: (b, 0, 0)),
                pl.BlockSpec((d_k, d_k), lambda b: (0, 0)),
                pl.BlockSpec((1, d_k), lambda b: (0, 0)),
                pl.BlockSpec((d_k, d_k), lambda b: (0, 0)),
                pl.BlockSpec((1, d_k), lambda b: (0, 0)),
                pl.BlockSpec((d_k, d_k), lambda b: (0, 0)),
                pl.BlockSpec((1, d_k), lambda b: (0, 0)),
                pl.BlockSpec((num_heads * d_k, d_model), lambda b: (0, 0)),
                pl.BlockSpec((1, d_model), lambda b: (0, 0)),
            ],
            out_specs=pl.BlockSpec((b_blk, Tq, d_model), lambda b: (b, 0, 0)),
        ),
        compiler_params=pltpu.CompilerParams(
            dimension_semantics=("parallel",)),
    )(qf, kf, vf, wq_t, bq, wk_t, bk, wv_t, bv, wo_t, bo)
    return out


def _reference(query, key, value, params, num_heads):
    """Pure-JAX reference reproducing the PyTorch forward (mask=None)."""
    bs, Tq, E = query.shape
    _, T, _ = key.shape
    d_k = E // num_heads
    qr = query.reshape(bs, Tq, num_heads, d_k)
    kr = key.reshape(bs, T, num_heads, d_k)
    vr = value.reshape(bs, T, num_heads, d_k)
    lin = lambda x, w, b: jnp.einsum("bthd,od->btho", x, w) + b
    q = jnp.transpose(lin(qr, params["wq"], params["bq"]), (0, 2, 1, 3))
    k = jnp.transpose(lin(kr, params["wk"], params["bk"]), (0, 2, 1, 3))
    v = jnp.transpose(lin(vr, params["wv"], params["bv"]), (0, 2, 1, 3))
    s = jnp.einsum("bhqd,bhkd->bhqk", q, k) / math.sqrt(float(d_k))
    p = jax.nn.softmax(s, axis=-1)
    aw = jnp.einsum("bhqk,bhkd->bqhd", p, v)          # 'ijkl,ijlr->ikjr'
    concat = aw.reshape(bs, Tq, num_heads * d_k)
    return jnp.einsum("btk,ok->bto", concat, params["wo"]) + params["bo"]


if __name__ == "__main__":
    # Module hyper-parameters: d_k per head, d_model output, 8 heads (default).
    num_heads = 8
    d_k = 128
    d_model = 128
    bs, tokens = 2, 8
    E = num_heads * d_k

    key0 = jax.random.PRNGKey(0)
    ks = jax.random.split(key0, 12)
    params = {
        "wq": jax.random.normal(ks[0], (d_k, d_k), jnp.float32) * 0.05,
        "bq": jax.random.normal(ks[1], (d_k,), jnp.float32) * 0.05,
        "wk": jax.random.normal(ks[2], (d_k, d_k), jnp.float32) * 0.05,
        "bk": jax.random.normal(ks[3], (d_k,), jnp.float32) * 0.05,
        "wv": jax.random.normal(ks[4], (d_k, d_k), jnp.float32) * 0.05,
        "bv": jax.random.normal(ks[5], (d_k,), jnp.float32) * 0.05,
        "wo": jax.random.normal(ks[6], (d_model, E), jnp.float32) * 0.05,
        "bo": jax.random.normal(ks[7], (d_model,), jnp.float32) * 0.05,
    }
    query = jax.random.normal(ks[8], (bs, tokens, E), jnp.float32)
    key_in = jax.random.normal(ks[9], (bs, tokens, E), jnp.float32)
    value = jax.random.normal(ks[10], (bs, tokens, E), jnp.float32)

    # Throughput path: bf16 MXU operands, f32 accumulation.
    out = multi_head_attention(query, key_in, value, params, num_heads,
                               compute_dtype=jnp.bfloat16)
    out = jax.block_until_ready(out)

    # Exact-parity path: f32 operands everywhere.
    out_f32 = multi_head_attention(query, key_in, value, params, num_heads,
                                   compute_dtype=jnp.float32)
    out_f32 = jax.block_until_ready(out_f32)

    ref = _reference(query, key_in, value, params, num_heads)
    assert out.shape == (bs, tokens, d_model)
    assert out_f32.shape == (bs, tokens, d_model)
    assert jnp.allclose(out_f32, ref, atol=1e-4, rtol=1e-4), "f32 path mismatch vs reference"
    assert jnp.allclose(out, ref, atol=2e-2, rtol=2e-2), "bf16 path mismatch vs reference"

    print("KERNEL_OK")
</pallas_src>

<mosaic_0001>
module attributes {stable_mosaic.version = 11 : i64} {
  func.func @_mha_fused_kernel(%arg0: i32, %arg1: memref<1x64x128xf32, #tpu.memory_space<vmem>>, %arg2: memref<1x64x128xf32, #tpu.memory_space<vmem>>, %arg3: memref<1x64x128xf32, #tpu.memory_space<vmem>>, %arg4: memref<128x128xf32, #tpu.memory_space<vmem>>, %arg5: memref<1x128xf32, #tpu.memory_space<vmem>>, %arg6: memref<128x128xf32, #tpu.memory_space<vmem>>, %arg7: memref<1x128xf32, #tpu.memory_space<vmem>>, %arg8: memref<128x128xf32, #tpu.memory_space<vmem>>, %arg9: memref<1x128xf32, #tpu.memory_space<vmem>>, %arg10: memref<1024x128xf32, #tpu.memory_space<vmem>>, %arg11: memref<1x128xf32, #tpu.memory_space<vmem>>, %arg12: memref<1x8x128xf32, #tpu.memory_space<vmem>>) attributes {dimension_semantics = [#tpu.dimension_semantics<parallel>], iteration_bounds = array<i64: 2>, scalar_prefetch = 0 : i64, scratch_operands = 0 : i64, tpu.core_type = #tpu.core_type<tc>, window_params = [{transform_indices = @transform_0, window_bounds = array<i64: 1, 64, 128>}, {transform_indices = @transform_1, window_bounds = array<i64: 1, 64, 128>}, {transform_indices = @transform_2, window_bounds = array<i64: 1, 64, 128>}, {pipeline_mode = #tpu.pipeline_mode<synchronous>, transform_indices = @transform_3, window_bounds = array<i64: 128, 128>}, {pipeline_mode = #tpu.pipeline_mode<synchronous>, transform_indices = @transform_4, window_bounds = array<i64: 1, 128>}, {pipeline_mode = #tpu.pipeline_mode<synchronous>, transform_indices = @transform_5, window_bounds = array<i64: 128, 128>}, {pipeline_mode = #tpu.pipeline_mode<synchronous>, transform_indices = @transform_6, window_bounds = array<i64: 1, 128>}, {pipeline_mode = #tpu.pipeline_mode<synchronous>, transform_indices = @transform_7, window_bounds = array<i64: 128, 128>}, {pipeline_mode = #tpu.pipeline_mode<synchronous>, transform_indices = @transform_8, window_bounds = array<i64: 1, 128>}, {pipeline_mode = #tpu.pipeline_mode<synchronous>, transform_indices = @transform_9, window_bounds = array<i64: 1024, 128>}, {pipeline_mode = #tpu.pipeline_mode<synchronous>, transform_indices = @transform_10, window_bounds = array<i64: 1, 128>}, {transform_indices = @transform_11, window_bounds = array<i64: 1, 8, 128>}]} {
    %c0 = arith.constant 0 : index
    %c0_0 = arith.constant 0 : index
    %c0_1 = arith.constant 0 : index
    %0 = vector.load %arg1[%c0, %c0_0, %c0_1] : memref<1x64x128xf32, #tpu.memory_space<vmem>>, vector<1x64x128xf32>
    %1 = vector.shape_cast %0 : vector<1x64x128xf32> to vector<64x128xf32>
    %2 = arith.truncf %1 : vector<64x128xf32> to vector<64x128xbf16>
    %c0_2 = arith.constant 0 : index
    %c0_3 = arith.constant 0 : index
    %c0_4 = arith.constant 0 : index
    %3 = vector.load %arg2[%c0_2, %c0_3, %c0_4] : memref<1x64x128xf32, #tpu.memory_space<vmem>>, vector<1x64x128xf32>
    %4 = vector.shape_cast %3 : vector<1x64x128xf32> to vector<64x128xf32>
    %5 = arith.truncf %4 : vector<64x128xf32> to vector<64x128xbf16>
    %c0_5 = arith.constant 0 : index
    %c0_6 = arith.constant 0 : index
    %c0_7 = arith.constant 0 : index
    %6 = vector.load %arg3[%c0_5, %c0_6, %c0_7] : memref<1x64x128xf32, #tpu.memory_space<vmem>>, vector<1x64x128xf32>
    %7 = vector.shape_cast %6 : vector<1x64x128xf32> to vector<64x128xf32>
    %8 = arith.truncf %7 : vector<64x128xf32> to vector<64x128xbf16>
    %c0_8 = arith.constant 0 : index
    %c0_9 = arith.constant 0 : index
    %9 = vector.load %arg4[%c0_8, %c0_9] : memref<128x128xf32, #tpu.memory_space<vmem>>, vector<128x128xf32>
    %10 = arith.truncf %9 : vector<128x128xf32> to vector<128x128xbf16>
    %cst = arith.constant dense<0.000000e+00> : vector<64x128xf32>
    %11 = tpu.matmul %2, %10, %cst {dimension_numbers = #tpu.dot_dimension_numbers<[1], [0], [0], [1], [0, 0, 1, 1], [], []>} : vector<64x128xbf16>, vector<128x128xbf16>, vector<64x128xf32> -> vector<64x128xf32>
    %c0_10 = arith.constant 0 : index
    %c0_11 = arith.constant 0 : index
    %12 = vector.load %arg5[%c0_10, %c0_11] : memref<1x128xf32, #tpu.memory_space<vmem>>, vector<1x128xf32>
    %13 = vector.broadcast %12 : vector<1x128xf32> to vector<64x128xf32>
    %14 = arith.addf %11, %13 : vector<64x128xf32>
    %c0_12 = arith.constant 0 : index
    %c0_13 = arith.constant 0 : index
    %15 = vector.load %arg6[%c0_12, %c0_13] : memref<128x128xf32, #tpu.memory_space<vmem>>, vector<128x128xf32>
    %16 = arith.truncf %15 : vector<128x128xf32> to vector<128x128xbf16>
    %cst_14 = arith.constant dense<0.000000e+00> : vector<64x128xf32>
    %17 = tpu.matmul %5, %16, %cst_14 {dimension_numbers = #tpu.dot_dimension_numbers<[1], [0], [0], [1], [0, 0, 1, 1], [], []>} : vector<64x128xbf16>, vector<128x128xbf16>, vector<64x128xf32> -> vector<64x128xf32>
    %c0_15 = arith.constant 0 : index
    %c0_16 = arith.constant 0 : index
    %18 = vector.load %arg7[%c0_15, %c0_16] : memref<1x128xf32, #tpu.memory_space<vmem>>, vector<1x128xf32>
    %19 = vector.broadcast %18 : vector<1x128xf32> to vector<64x128xf32>
    %20 = arith.addf %17, %19 : vector<64x128xf32>
    %c0_17 = arith.constant 0 : index
    %c0_18 = arith.constant 0 : index
    %21 = vector.load %arg8[%c0_17, %c0_18] : memref<128x128xf32, #tpu.memory_space<vmem>>, vector<128x128xf32>
    %22 = arith.truncf %21 : vector<128x128xf32> to vector<128x128xbf16>
    %cst_19 = arith.constant dense<0.000000e+00> : vector<64x128xf32>
    %23 = tpu.matmul %8, %22, %cst_19 {dimension_numbers = #tpu.dot_dimension_numbers<[1], [0], [0], [1], [0, 0, 1, 1], [], []>} : vector<64x128xbf16>, vector<128x128xbf16>, vector<64x128xf32> -> vector<64x128xf32>
    %c0_20 = arith.constant 0 : index
    %c0_21 = arith.constant 0 : index
    %24 = vector.load %arg9[%c0_20, %c0_21] : memref<1x128xf32, #tpu.memory_space<vmem>>, vector<1x128xf32>
    %25 = vector.broadcast %24 : vector<1x128xf32> to vector<64x128xf32>
    %26 = arith.addf %23, %25 : vector<64x128xf32>
    %27 = vector.shape_cast %14 : vector<64x128xf32> to vector<8x8x128xf32>
    %28 = arith.truncf %27 : vector<8x8x128xf32> to vector<8x8x128xbf16>
    %29 = vector.shape_cast %20 : vector<64x128xf32> to vector<8x8x128xf32>
    %30 = arith.truncf %29 : vector<8x8x128xf32> to vector<8x8x128xbf16>
    %31 = vector.shape_cast %26 : vector<64x128xf32> to vector<8x8x128xf32>
    "tpu.trace_start"() <{level = 10 : i32, message = "bqd,bkd->bqk"}> : () -> ()
    %cst_22 = arith.constant dense<0.000000e+00> : vector<8x8x8xf32>
    %32 = tpu.matmul %28, %30, %cst_22 {dimension_numbers = #tpu.dot_dimension_numbers<[2], [2], [1], [1], [0, 0, 0, 1, 1, 1], [0], [0]>} : vector<8x8x128xbf16>, vector<8x8x128xbf16>, vector<8x8x8xf32> -> vector<8x8x8xf32>
    "tpu.trace_stop"() : () -> ()
    %cst_23 = arith.constant dense<0xFF800000> : vector<8x8xf32>
    %33 = vector.multi_reduction <maximumf>, %32, %cst_23 [2] : vector<8x8x8xf32> to vector<8x8xf32>
    %34 = vector.shape_cast %33 : vector<8x8xf32> to vector<8x8x1xf32>
    %35 = vector.broadcast %34 : vector<8x8x1xf32> to vector<8x8x8xf32>
    %36 = arith.subf %32, %35 : vector<8x8x8xf32>
    %37 = math.exp %36 : vector<8x8x8xf32>
    %cst_24 = arith.constant dense<0.000000e+00> : vector<8x8xf32>
    %38 = vector.multi_reduction <add>, %37, %cst_24 [2] : vector<8x8x8xf32> to vector<8x8xf32>
    %39 = vector.shape_cast %38 : vector<8x8xf32> to vector<8x8x1xf32>
    %40 = vector.broadcast %39 : vector<8x8x1xf32> to vector<8x8x8xf32>
    %41 = arith.divf %37, %40 : vector<8x8x8xf32>
    %42 = arith.truncf %41 : vector<8x8x8xf32> to vector<8x8x8xbf16>
    %43 = arith.truncf %31 : vector<8x8x128xf32> to vector<8x8x128xbf16>
    "tpu.trace_start"() <{level = 10 : i32, message = "bqk,bkd->bqd"}> : () -> ()
    %cst_25 = arith.constant dense<0.000000e+00> : vector<8x8x128xf32>
    %44 = tpu.matmul %42, %43, %cst_25 {dimension_numbers = #tpu.dot_dimension_numbers<[2], [1], [1], [2], [0, 0, 0, 1, 1, 2], [0], [0]>} : vector<8x8x8xbf16>, vector<8x8x128xbf16>, vector<8x8x128xf32> -> vector<8x8x128xf32>
    "tpu.trace_stop"() : () -> ()
    %45 = vector.shape_cast %44 : vector<8x8x128xf32> to vector<1x8x8x128xf32>
    %46 = vector.extract_strided_slice %45 {offsets = [0, 0, 0, 0], sizes = [1, 1, 8, 128], strides = [1, 1, 1, 1]} : vector<1x8x8x128xf32> to vector<1x1x8x128xf32>
    %47 = vector.shape_cast %46 : vector<1x1x8x128xf32> to vector<1x8x128xf32>
    %48 = vector.extract_strided_slice %45 {offsets = [0, 1, 0, 0], sizes = [1, 1, 8, 128], strides = [1, 1, 1, 1]} : vector<1x8x8x128xf32> to vector<1x1x8x128xf32>
    %49 = vector.shape_cast %48 : vector<1x1x8x128xf32> to vector<1x8x128xf32>
    %50 = vector.extract_strided_slice %45 {offsets = [0, 2, 0, 0], sizes = [1, 1, 8, 128], strides = [1, 1, 1, 1]} : vector<1x8x8x128xf32> to vector<1x1x8x128xf32>
    %51 = vector.shape_cast %50 : vector<1x1x8x128xf32> to vector<1x8x128xf32>
    %52 = vector.extract_strided_slice %45 {offsets = [0, 3, 0, 0], sizes = [1, 1, 8, 128], strides = [1, 1, 1, 1]} : vector<1x8x8x128xf32> to vector<1x1x8x128xf32>
    %53 = vector.shape_cast %52 : vector<1x1x8x128xf32> to vector<1x8x128xf32>
    %54 = vector.extract_strided_slice %45 {offsets = [0, 4, 0, 0], sizes = [1, 1, 8, 128], strides = [1, 1, 1, 1]} : vector<1x8x8x128xf32> to vector<1x1x8x128xf32>
    %55 = vector.shape_cast %54 : vector<1x1x8x128xf32> to vector<1x8x128xf32>
    %56 = vector.extract_strided_slice %45 {offsets = [0, 5, 0, 0], sizes = [1, 1, 8, 128], strides = [1, 1, 1, 1]} : vector<1x8x8x128xf32> to vector<1x1x8x128xf32>
    %57 = vector.shape_cast %56 : vector<1x1x8x128xf32> to vector<1x8x128xf32>
    %58 = vector.extract_strided_slice %45 {offsets = [0, 6, 0, 0], sizes = [1, 1, 8, 128], strides = [1, 1, 1, 1]} : vector<1x8x8x128xf32> to vector<1x1x8x128xf32>
    %59 = vector.shape_cast %58 : vector<1x1x8x128xf32> to vector<1x8x128xf32>
    %60 = vector.extract_strided_slice %45 {offsets = [0, 7, 0, 0], sizes = [1, 1, 8, 128], strides = [1, 1, 1, 1]} : vector<1x8x8x128xf32> to vector<1x1x8x128xf32>
    %61 = vector.shape_cast %60 : vector<1x1x8x128xf32> to vector<1x8x128xf32>
    %62 = tpu.concatenate %47, %49, %51, %53, %55, %57, %59, %61 in 2 : vector<1x8x128xf32>, vector<1x8x128xf32>, vector<1x8x128xf32>, vector<1x8x128xf32>, vector<1x8x128xf32>, vector<1x8x128xf32>, vector<1x8x128xf32>, vector<1x8x128xf32> -> vector<1x8x1024xf32>
    %63 = vector.shape_cast %62 : vector<1x8x1024xf32> to vector<8x1024xf32>
    %64 = arith.truncf %63 : vector<8x1024xf32> to vector<8x1024xbf16>
    %c0_26 = arith.constant 0 : index
    %c0_27 = arith.constant 0 : index
    %65 = vector.load %arg10[%c0_26, %c0_27] : memref<1024x128xf32, #tpu.memory_space<vmem>>, vector<1024x128xf32>
    %66 = arith.truncf %65 : vector<1024x128xf32> to vector<1024x128xbf16>
    %cst_28 = arith.constant dense<0.000000e+00> : vector<8x128xf32>
    %67 = tpu.matmul %64, %66, %cst_28 {dimension_numbers = #tpu.dot_dimension_numbers<[1], [0], [0], [1], [0, 0, 1, 1], [], []>} : vector<8x1024xbf16>, vector<1024x128xbf16>, vector<8x128xf32> -> vector<8x128xf32>
    %c0_29 = arith.constant 0 : index
    %c0_30 = arith.constant 0 : index
    %68 = vector.load %arg11[%c0_29, %c0_30] : memref<1x128xf32, #tpu.memory_space<vmem>>, vector<1x128xf32>
    %69 = vector.broadcast %68 : vector<1x128xf32> to vector<8x128xf32>
    %70 = arith.addf %67, %69 : vector<8x128xf32>
    %71 = vector.shape_cast %70 : vector<8x128xf32> to vector<1x8x128xf32>
    %c0_31 = arith.constant 0 : index
    %c0_32 = arith.constant 0 : index
    %c0_33 = arith.constant 0 : index
    %72 = vector.load %arg12[%c0_31, %c0_32, %c0_33] : memref<1x8x128xf32, #tpu.memory_space<vmem>>, vector<1x8x128xf32>
    tpu.vector_store %arg12[%c0_31, %c0_32, %c0_33], %71 {strides = array<i32>} : memref<1x8x128xf32, #tpu.memory_space<vmem>>, vector<1x8x128xf32>,
    return
  }
  func.func @transform_0(%arg0: i32) -> (i32, i32, i32) {
    %c0_i32 = arith.constant 0 : i32
    %c0_i32_0 = arith.constant 0 : i32
    %c0_i32_1 = arith.constant 0 : i32
    return %arg0, %c0_i32, %c0_i32_0 : i32, i32, i32
  }
  func.func @transform_1(%arg0: i32) -> (i32, i32, i32) {
    %c0_i32 = arith.constant 0 : i32
    %c0_i32_0 = arith.constant 0 : i32
    %c0_i32_1 = arith.constant 0 : i32
    return %arg0, %c0_i32, %c0_i32_0 : i32, i32, i32
  }
  func.func @transform_2(%arg0: i32) -> (i32, i32, i32) {
    %c0_i32 = arith.constant 0 : i32
    %c0_i32_0 = arith.constant 0 : i32
    %c0_i32_1 = arith.constant 0 : i32
    return %arg0, %c0_i32, %c0_i32_0 : i32, i32, i32
  }
  func.func @transform_3(%arg0: i32) -> (i32, i32) {
    %c0_i32 = arith.constant 0 : i32
    %c0_i32_0 = arith.constant 0 : i32
    %c0_i32_1 = arith.constant 0 : i32
    return %c0_i32, %c0_i32_0 : i32, i32
  }
  func.func @transform_4(%arg0: i32) -> (i32, i32) {
    %c0_i32 = arith.constant 0 : i32
    %c0_i32_0 = arith.constant 0 : i32
    %c0_i32_1 = arith.constant 0 : i32
    return %c0_i32, %c0_i32_0 : i32, i32
  }
  func.func @transform_5(%arg0: i32) -> (i32, i32) {
    %c0_i32 = arith.constant 0 : i32
    %c0_i32_0 = arith.constant 0 : i32
    %c0_i32_1 = arith.constant 0 : i32
    return %c0_i32, %c0_i32_0 : i32, i32
  }
  func.func @transform_6(%arg0: i32) -> (i32, i32) {
    %c0_i32 = arith.constant 0 : i32
    %c0_i32_0 = arith.constant 0 : i32
    %c0_i32_1 = arith.constant 0 : i32
    return %c0_i32, %c0_i32_0 : i32, i32
  }
  func.func @transform_7(%arg0: i32) -> (i32, i32) {
    %c0_i32 = arith.constant 0 : i32
    %c0_i32_0 = arith.constant 0 : i32
    %c0_i32_1 = arith.constant 0 : i32
    return %c0_i32, %c0_i32_0 : i32, i32
  }
  func.func @transform_8(%arg0: i32) -> (i32, i32) {
    %c0_i32 = arith.constant 0 : i32
    %c0_i32_0 = arith.constant 0 : i32
    %c0_i32_1 = arith.constant 0 : i32
    return %c0_i32, %c0_i32_0 : i32, i32
  }
  func.func @transform_9(%arg0: i32) -> (i32, i32) {
    %c0_i32 = arith.constant 0 : i32
    %c0_i32_0 = arith.constant 0 : i32
    %c0_i32_1 = arith.constant 0 : i32
    return %c0_i32, %c0_i32_0 : i32, i32
  }
  func.func @transform_10(%arg0: i32) -> (i32, i32) {
    %c0_i32 = arith.constant 0 : i32
    %c0_i32_0 = arith.constant 0 : i32
    %c0_i32_1 = arith.constant 0 : i32
    return %c0_i32, %c0_i32_0 : i32, i32
  }
  func.func @transform_11(%arg0: i32) -> (i32, i32, i32) {
    %c0_i32 = arith.constant 0 : i32
    %c0_i32_0 = arith.constant 0 : i32
    %c0_i32_1 = arith.constant 0 : i32
    return %arg0, %c0_i32, %c0_i32_0 : i32, i32, i32
  }
}

</mosaic_0001>

<bundles_post_ra>
// kernel: tpu_custom_call.1
= control target key start
LH: loop header
LB: loop body
LE: loop exit
PB: predicated region body
PF: predicated region fallthrough
CT: control target
= control target key end

     0   :  { %s3614_s0 = inlined_call_operand.hbm [shape: f32[2,64,128], index: 0, kind: input, shape index: {}]   ;;  %s3615_s1 = inlined_call_operand.hbm [shape: f32[2,64,128], index: 1, kind: input, shape index: {}]   ;;  %s3616_s2 = inlined_call_operand.hbm [shape: f32[2,64,128], index: 2, kind: input, shape index: {}]   ;;  %s3617_s3 = inlined_call_operand.hbm [shape: f32[128,128], index: 3, kind: input, shape index: {}]   ;;  %s3618_s4 = inlined_call_operand.vmem [shape: f32[1,128], index: 4, kind: input, shape index: {}]   ;;  %s3619_s5 = inlined_call_operand.hbm [shape: f32[128,128], index: 5, kind: input, shape index: {}]   ;;  %s3620_s6 = inlined_call_operand.vmem [shape: f32[1,128], index: 6, kind: input, shape index: {}]   ;;  %s3621_s7 = inlined_call_operand.hbm [shape: f32[128,128], index: 7, kind: input, shape index: {}]   ;;  %s3622_s8 = inlined_call_operand.vmem [shape: f32[1,128], index: 8, kind: input, shape index: {}]   ;;  %s3623_s9 = inlined_call_operand.hbm [shape: f32[1024,128], index: 9, kind: input, shape index: {}]   ;;  %s3624_s10 = inlined_call_operand.vmem [shape: f32[1,128], index: 10, kind: input, shape index: {}]   ;;  %s3625_s11 = inlined_call_operand.hbm [shape: f32[2,8,128], index: 11, kind: output, shape index: {}]  }
   0x1   :  { %3651 = sst [smem:[#allocation26_spill]] %s3615_s1 }
   0x2   :  { %3652 = sst [smem:[#allocation27_spill]] %s3617_s3 }
   0x3   :  { %3653 = sst [smem:[#allocation28_spill]] %s3618_s4 }
   0x4   :  { %3654 = sst [smem:[#allocation29_spill]] %s3621_s7 }
   0x5   :  { %3655 = sst [smem:[#allocation30_spill]] %s3622_s8 }
   0x6   :  { %3656 = sst [smem:[#allocation31_spill]] %s3624_s10 }
   0x7   :  { %3657 = sst [smem:[#allocation32_spill]] %s3625_s11 }
   0x8   :  { %16 = vsyncpa [#allocation3], 0 }
   0x9   :  { %18 = vsyncpa [#allocation3 + $0x1], 0 }
   0xa   :  { %19 = vsyncpa [#allocation6], 0 }
   0xb   :  { %21 = vsyncpa [#allocation6 + $0x1], 0 }
   0xc   :  { %22 = vsyncpa [#allocation9], 0 }
   0xd   :  { %23 = vsyncpa [#allocation12], 0 }
   0xe   :  { %24 = vsyncpa [#allocation4], 0 }
   0xf   :  { %26 = vsyncpa [#allocation4 + $0x1], 0  ;;  %s3063_s17 = smov 0   ;;  %s3065_s18 = smov 0  }
  0x10   :  { %s3067_s19 = smov 0   ;;  %s3069_s20 = smov 0  }
  0x11 LB: > { %3658 = sst [smem:[#allocation20_spill]] %s2977_s17  ;;  %s3084_s21 = sadd.s32 4294967295, %s2989_s20   ;;  %s2989_s20 = sphi %s3069_s20, %s3700_s20   ;;  %s2985_s19 = sphi %s3067_s19, %s3704_s19   ;;  %s2981_s18 = sphi %s3065_s18, %s3703_s18   ;;  %s2977_s17 = sphi %s3063_s17, %s3702_s17  }
  0x12   : > { %3659 = sst [smem:[#allocation21_spill]] %s2989_s20  ;;  %s2208_s22 = sadd.s32 4294967294, %s2989_s20  }
  0x13   : > { %p52_p0 = scmp.ne.s32.totalorder %s2981_s18, %s2977_s17  ;;  %p3626_p1 = scmp.eq.s32.totalorder %s3084_s21, 0 }
  0x14   : > { %p302_p3 = scmp.eq.s32.totalorder %s2208_s22, 1  ;;  %p2209_p5 = scmp.ge.s32.totalorder %s2989_s20, 1 }
  0x15   : > { %p3093_p4 = por %p3626_p1, %p52_p0  ;;  %p309_p7 = scmp.lt.s32.totalorder %s2989_s20, 3 }
  0x16   : > { %p3098_p6 = por %p302_p3, %p52_p0  ;;  %s2991_s26 = smov [#allocation8]  }
  0x17   : > { %s3660_s23 = scalar_select %p3093_p4, 1, 0 }
  0x18   : > { %s3661_s24 = scalar_select %p3098_p6, 1, 0 }
  0x19   : > { %p3103_p8 = pnand %p2209_p5, %p309_p7  ;;  %s321_s27 = sshll.u32 %s2991_s26, 4  ;;  %s3107_s27 = int_to_ptr.vmem [resolvable:$true] %s321_s27 }
  0x1a   : > { %3662 = sst [smem:[#allocation22_spill]] %s3661_s24  ;;  %s2992_s29 = smov [#allocation11]  }
  0x1b   : > { %s3663_s25 = scalar_select %p3103_p8, 1, 0 }
  0x1c   : > { %p2600_p9 = pneg %p3103_p8  ;;  %s353_s30 = sshll.u32 %s2992_s29, 4  ;;  %s3118_s30 = int_to_ptr.vmem [resolvable:$true] %s353_s30 }
  0x1d   : > { %s3665_s3 = sld [smem:[#allocation27_spill]] }
  0x1e   : > { %p3114_p11 = pnand %p2600_p9, %p3626_p1 }
  0x20   : > { %s3664_s28 = scalar_select %p3114_p11, 1, 0 }
  0x21   : > { %p3128_p13 = pneg %p3114_p11 }
  0x23   : > { %s2709_s14 = scalar_lea.hbm %s3665_s3, 2048 }
  0x24   : > { %p2710_p12 = scmp.ne.s32.totalorder %s3665_s3, %s2709_s14  ;;  %p2716_p5 = scmp.lt.u32.totalorder %s2709_s14, %s3665_s3 }
  0x25   : > { %s3666_s22 = scalar_select %p3128_p13, 1, 0 }
  0x26   : > { %p2712_p0 = pnand %p3128_p13, %p2710_p12 }
  0x28   : > { %p2713_p3 = pneg %p2712_p0 }
  0x2a   : > { %p2718_p7 = pnand %p2716_p5, %p2713_p3 }
  0x2c   : > { %2721 = shalt.err (!%p2718_p7)
}
  0x2d   : > { %s2722_s12 = scalar_lea.vmem %s3107_s27, 2048  ;;  %p2730_p2 = scmp.lt.s32.totalorder %s3107_s27, %s3107_s27 }
  0x2e   : > { %p2723_p9 = scmp.ne.s32.totalorder %s3107_s27, %s2722_s12  ;;  %p2731_p6 = scmp.lt.s32.totalorder %s2722_s12, %s2722_s12 }
  0x30   : > { %p2725_p10 = pnand %p2723_p9, %p3128_p13  ;;  %p2732_p12 = por %p2731_p6, %p2730_p2 }
  0x32   : > { %p2726_p1 = pneg %p2725_p10 }
  0x34   : > { %p2733_p0 = pnand %p2732_p12, %p2726_p1 }
  0x36   : > { %2736 = shalt.err (!%p2733_p0)
}
  0x37   : > { %s3631_s13 = smov 128   ;;  %s3633_s14 = smov 8  }
  0x38   : > { %2603 = dma.hbm_to_vmem [thread:$0]  (!%p3114_p11), %s3665_s3, 2048, %s3107_s27, [#allocation9], %s3631_s13, %s3631_s13, %s3633_s14  }
  0x39   : > { %s3667_s7 = sld [smem:[#allocation29_spill]] }
  0x3f   : > { %s2737_s12 = scalar_lea.hbm %s3667_s7, 2048 }
  0x40   : > { %p2738_p1 = scmp.ne.s32.totalorder %s3667_s7, %s2737_s12  ;;  %p2744_p10 = scmp.lt.u32.totalorder %s2737_s12, %s3667_s7 }
  0x42   : > { %p2740_p2 = pnand %p2738_p1, %p3128_p13 }
  0x44   : > { %p2741_p6 = pneg %p2740_p2 }
  0x46   : > { %p2746_p3 = pnand %p2744_p10, %p2741_p6 }
  0x48   : > { %2749 = shalt.err (!%p2746_p3)
}
  0x49   : > { %s2750_s27 = scalar_lea.vmem %s3118_s30, 2048  ;;  %p2758_p12 = scmp.lt.s32.totalorder %s3118_s30, %s3118_s30 }
  0x4a   : > { %p2751_p5 = scmp.ne.s32.totalorder %s3118_s30, %s2750_s27  ;;  %p2759_p0 = scmp.lt.s32.totalorder %s2750_s27, %s2750_s27 }
  0x4c   : > { %p2753_p7 = pnand %p2751_p5, %p3128_p13  ;;  %p2760_p1 = por %p2759_p0, %p2758_p12 }
  0x4e   : > { %p2754_p9 = pneg %p2753_p7 }
  0x50   : > { %p2761_p2 = pnand %p2760_p1, %p2754_p9 }
  0x52   : > { %2764 = shalt.err (!%p2761_p2)
}
  0x53   : > { %2609 = dma.hbm_to_vmem [thread:$0]  (!%p3114_p11), %s3667_s7, 2048, %s3118_s30, [#allocation12], %s3631_s13, %s3631_s13, %s3633_s14  }
  0x54   : > { %s3179_s17 = sadd.s32 1, %s2989_s20   ;;  %s39_s24 = sadd.s32 1, %s2985_s19 }
  0x55   : > { %3668 = sst [smem:[#allocation23_spill]] %s3179_s17  ;;  %s36_s15 = ssub.s32 %s2989_s20, %s3179_s17 }
  0x56   : > { %p46_p6 = scmp.ne.s32.totalorder %s2985_s19, %s2981_s18  ;;  %p37_p10 = scmp.eq.s32.totalorder %s36_s15, 0 }
  0x57   : > { %p47_p3 = scmp.eq.s32.totalorder %s2989_s20, 0  ;;  %p3669_p5 = scmp.eq.s32.totalorder %s3084_s21, 1 }
  0x58   : > { %p2631_p9 = scmp.lt.s32.totalorder %s2989_s20, 2  ;;  %s3630_s29 = sand.u32 1, %s2985_s19  }
  0x59   : > { %p3189_p7 = por %p3669_p5, %p46_p6  ;;  %p48_p12 = por %p47_p3, %p46_p6 }
  0x5a   : > { %s3195_s26 = scalar_select %p37_p10, %s2985_s19, %s39_s24  }
  0x5b   : > { %s3670_s16 = scalar_select %p3189_p7, 1, 0 }
  0x5c   : > { %3672 = sst [smem:[#allocation25_spill]] %s3195_s26  ;;  %s3200_s30 = sshll.u32 %s3630_s29, 6 }
  0x5d   : > { %3671 = sst [smem:[#allocation24_spill]] %s3670_s16  ;;  %s3203_s12 = sshll.u32 %s2989_s20, 10 }
  0x5e   : > { %p3205_p0 = pnand %p2631_p9, %p48_p12  ;;  %s407_s10 = sand.u32 1, %s2989_s20  }
  0x5f   : > { %s3674_s1 = sld [smem:[#allocation26_spill]]  ;;  %s411_s29 = scalar_lea.vmem [#allocation5], %s3200_s30 }
  0x60   : > { %s3673_s27 = scalar_select %p3205_p0, 1, 0 }
  0x61   : > { %s418_s13 = sshll.u32 %s411_s29, 4  ;;  %s2995_s14 = smov [#allocation10]   ;;  %s3217_s13 = int_to_ptr.vmem [resolvable:$true] %s418_s13 }
  0x62   : > { %s3219_s3 = sshll.u32 %s2995_s14, 4  ;;  %s3221_s7 = scalar_lea.sflag [#allocation6], %s407_s10  ;;  %s338_s3 = int_to_ptr.vmem [resolvable:$true] %s3219_s3 }
  0x63   : > { %p3227_p2 = pneg %p3205_p0 }
  0x65   : > { %s3214_s24 = scalar_lea.hbm %s3674_s1, %s3203_s12  ;;  %s2770_s17 = scalar_lea.hbm %s3674_s1, 2048 }
  0x66   : > { %s2765_s26 = scalar_lea.hbm %s3214_s24, 1024  ;;  %p2771_p3 = scmp.lt.u32.totalorder %s3214_s24, %s3674_s1 }
  0x67   : > { %p2766_p1 = scmp.ne.s32.totalorder %s3214_s24, %s2765_s26  ;;  %p2772_p5 = scmp.lt.u32.totalorder %s2770_s17, %s2765_s26 }
  0x68   : > { %s3675_s11 = scalar_select %p3227_p2, 1, 0 }
  0x69   : > { %p2768_p6 = pnand %p3227_p2, %p2766_p1  ;;  %p2773_p9 = por %p2772_p5, %p2771_p3 }
  0x6a   : > { %p2774_p12 = scmp.lt.u32.totalorder %s2765_s26, %s3214_s24 }
  0x6b   : > { %p2769_p10 = pneg %p2768_p6 }
  0x6c   : > { %p2775_p7 = por %p2774_p12, %p2773_p9 }
  0x6e   : > { %p2776_p4 = pnand %p2775_p7, %p2769_p10 }
  0x70   : > { %2779 = shalt.err (!%p2776_p4)
}
  0x71   : > { %s2780_s10 = scalar_lea.vmem %s3217_s13, 1024  ;;  %s2996_s15 = smov [#allocation5]  }
  0x72   : > { %p2781_p1 = scmp.ne.s32.totalorder %s3217_s13, %s2780_s10  ;;  %s2785_s29 = sshll.u32 %s2996_s15, 4  ;;  %s2786_s29 = int_to_ptr.vmem [resolvable:$false] %s2785_s29 }
  0x73   : > { %s2787_s20 = scalar_lea.vmem %s2786_s29, 2048  ;;  %p2788_p11 = scmp.lt.s32.totalorder %s3217_s13, %s2786_s29 }
  0x74   : > { %p2783_p6 = pnand %p2781_p1, %p3227_p2  ;;  %p2789_p13 = scmp.lt.s32.totalorder %s2787_s20, %s2780_s10 }
  0x76   : > { %p2784_p8 = pneg %p2783_p6  ;;  %p2790_p3 = por %p2789_p13, %p2788_p11 }
  0x78   : > { %p2791_p5 = pnand %p2790_p3, %p2784_p8 }
  0x7a   : > { %2794 = shalt.err (!%p2791_p5)
}
  0x7b   : > { %s3676_s17 = smov 8   ;;  %s3677_s26 = smov 128  }
  0x7c   : > { %2619 = dma.hbm_to_vmem [thread:$0]  (!%p3205_p0), %s3214_s24, 1024, %s3217_s13, %s3221_s7, %s3677_s26, %s3677_s26, %s3676_s17  }
  0x7d   : > { %s2795_s29 = scalar_lea.hbm %s3619_s5, 2048  ;;  %p3678_p8 = scmp.ne.s32.totalorder %s3666_s22, 0 }
  0x7e   : > { %p2796_p4 = scmp.ne.s32.totalorder %s3619_s5, %s2795_s29  ;;  %p2802_p7 = scmp.lt.u32.totalorder %s2795_s29, %s3619_s5 }
  0x80   : > { %p2798_p11 = pnand %p2796_p4, %p3678_p8 }
  0x82   : > { %p2799_p13 = pneg %p2798_p11 }
  0x84   : > { %p2804_p10 = pnand %p2802_p7, %p2799_p13 }
  0x86   : > { %2807 = shalt.err (!%p2804_p10)
}
  0x87   : > { %s2808_s8 = scalar_lea.vmem %s338_s3, 2048  ;;  %p2816_p6 = scmp.lt.s32.totalorder %s338_s3, %s338_s3 }
  0x88   : > { %p2809_p9 = scmp.ne.s32.totalorder %s338_s3, %s2808_s8  ;;  %p2817_p3 = scmp.lt.s32.totalorder %s2808_s8, %s2808_s8 }
  0x8a   : > { %p2811_p12 = pnand %p2809_p9, %p3678_p8  ;;  %p2818_p5 = por %p2817_p3, %p2816_p6 }
  0x8c   : > { %p2812_p1 = pneg %p2811_p12 }
  0x8e   : > { %p2819_p0 = pnand %p2818_p5, %p2812_p1 }
  0x90   : > { %2822 = shalt.err (!%p2819_p0)
}
  0x91   : > { %p3679_p4 = scmp.ne.s32.totalorder %s3664_s28, 0  ;;  %s2997_s16 = smov [#allocation13]  }
  0x92   : > { %s369_s24 = sshll.u32 %s2997_s16, 4  ;;  %s2823_s8 = scalar_lea.hbm %s3623_s9, 16384  ;;  %s370_s24 = int_to_ptr.vmem [resolvable:$true] %s369_s24 }
  0x93   : > { %2606 = dma.hbm_to_vmem [thread:$0]  (!%p3679_p4), %s3619_s5, 2048, %s338_s3, [#allocation9], %s3677_s26, %s3677_s26, %s3676_s17  }
  0x94   : > { %p2824_p0 = scmp.ne.s32.totalorder %s3623_s9, %s2823_s8  ;;  %p2830_p7 = scmp.lt.u32.totalorder %s2823_s8, %s3623_s9 }
  0x96   : > { %p2826_p11 = pnand %p2824_p0, %p3678_p8 }
  0x98   : > { %p2827_p13 = pneg %p2826_p11 }
  0x9a   : > { %p2832_p10 = pnand %p2830_p7, %p2827_p13 }
  0x9c   : > { %2835 = shalt.err (!%p2832_p10)
}
  0x9d   : > { %s2836_s3 = scalar_lea.vmem %s370_s24, 16384  ;;  %p2844_p6 = scmp.lt.s32.totalorder %s370_s24, %s370_s24 }
  0x9e   : > { %p2837_p9 = scmp.ne.s32.totalorder %s370_s24, %s2836_s3  ;;  %p2845_p3 = scmp.lt.s32.totalorder %s2836_s3, %s2836_s3 }
  0xa0   : > { %p2839_p12 = pnand %p2837_p9, %p3678_p8  ;;  %p2846_p5 = por %p2845_p3, %p2844_p6 }
  0xa2   : > { %p2840_p1 = pneg %p2839_p12 }
  0xa4   : > { %p2847_p2 = pnand %p2846_p5, %p2840_p1 }
  0xa6   : > { %2850 = shalt.err (!%p2847_p2)
}
  0xa7   : > { %2612 = dma.hbm_to_vmem [thread:$0]  (!%p3679_p4), %s3623_s9, 16384, %s370_s24, [#allocation12], %s3677_s26, %s3677_s26, %s3676_s17  }
  0xa8   : > { %s3301_s16 = scalar_lea.hbm %s3614_s0, %s3203_s12  ;;  %s390_s28 = scalar_lea.vmem [#allocation2], %s3200_s30 }
  0xa9   : > { %s397_s14 = sshll.u32 %s390_s28, 4  ;;  %s3680_s15 = sand.u32 1, %s2985_s19   ;;  %s3304_s14 = int_to_ptr.vmem [resolvable:$true] %s397_s14 }
  0xaa   : > { %s3308_s8 = scalar_lea.sflag [#allocation3], %s3680_s15  ;;  %s2851_s29 = scalar_lea.hbm %s3301_s16, 1024 }
  0xab   : > { %p2852_p2 = scmp.ne.s32.totalorder %s3301_s16, %s2851_s29  ;;  %p3681_p8 = scmp.ne.s32.totalorder %s3675_s11, 0 }
  0xac   : > { %s2856_s20 = scalar_lea.hbm %s3614_s0, 2048  ;;  %p2857_p11 = scmp.lt.u32.totalorder %s3301_s16, %s3614_s0 }
  0xad   : > { %p2854_p4 = pnand %p2852_p2, %p3681_p8  ;;  %p2858_p13 = scmp.lt.u32.totalorder %s2856_s20, %s2851_s29 }
  0xae   : > { %p2860_p10 = scmp.lt.u32.totalorder %s2851_s29, %s3301_s16 }
  0xaf   : > { %p2855_p0 = pneg %p2854_p4  ;;  %p2859_p7 = por %p2858_p13, %p2857_p11 }
  0xb1   : > { %p2861_p9 = por %p2860_p10, %p2859_p7 }
  0xb3   : > { %p2862_p12 = pnand %p2861_p9, %p2855_p0 }
  0xb5   : > { %2865 = shalt.err (!%p2862_p12)
}
  0xb6   : > { %s2866_s1 = scalar_lea.vmem %s3304_s14, 1024  ;;  %s2998_s22 = smov [#allocation2]  }
  0xb7   : > { %p2867_p1 = scmp.ne.s32.totalorder %s3304_s14, %s2866_s1  ;;  %s2871_s13 = sshll.u32 %s2998_s22, 4  ;;  %s2872_s13 = int_to_ptr.vmem [resolvable:$false] %s2871_s13 }
  0xb8   : > { %s2873_s28 = scalar_lea.vmem %s2872_s13, 2048  ;;  %p2874_p5 = scmp.lt.s32.totalorder %s3304_s14, %s2872_s13 }
  0xb9   : > { %p2869_p6 = pnand %p2867_p1, %p3681_p8  ;;  %p2875_p2 = scmp.lt.s32.totalorder %s2873_s28, %s2866_s1 }
  0xbb   : > { %p2870_p3 = pneg %p2869_p6  ;;  %p2876_p4 = por %p2875_p2, %p2874_p5 }
  0xbd   : > { %p2877_p11 = pnand %p2876_p4, %p2870_p3 }
  0xbf   : > { %2880 = shalt.err (!%p2877_p11)
}
  0xc0   : > { %p3682_p0 = scmp.ne.s32.totalorder %s3673_s27, 0  ;;  %s3339_s24 = scalar_lea.hbm %s3616_s2, %s3203_s12 }
  0xc1   : > { %s432_s10 = scalar_lea.vmem [#allocation7], %s3200_s30  ;;  %s2881_s3 = scalar_lea.hbm %s3339_s24, 1024 }
  0xc2   : > { %2616 = dma.hbm_to_vmem [thread:$0]  (!%p3682_p0), %s3301_s16, 1024, %s3304_s14, %s3308_s8, %s3677_s26, %s3677_s26, %s3676_s17  }
  0xc3   : > { %s439_s20 = sshll.u32 %s432_s10, 4  ;;  %p2882_p13 = scmp.ne.s32.totalorder %s3339_s24, %s2881_s3  ;;  %s3342_s20 = int_to_ptr.vmem [resolvable:$true] %s439_s20 }
  0xc4   : > { %s2886_s14 = scalar_lea.hbm %s3616_s2, 2048  ;;  %p2887_p9 = scmp.lt.u32.totalorder %s3339_s24, %s3616_s2 }
  0xc5   : > { %p2884_p7 = pnand %p2882_p13, %p3681_p8  ;;  %p2888_p12 = scmp.lt.u32.totalorder %s2886_s14, %s2881_s3 }
  0xc6   : > { %p2890_p6 = scmp.lt.u32.totalorder %s2881_s3, %s3339_s24 }
  0xc7   : > { %p2885_p10 = pneg %p2884_p7  ;;  %p2889_p1 = por %p2888_p12, %p2887_p9 }
  0xc9   : > { %p2891_p3 = por %p2890_p6, %p2889_p1 }
  0xcb   : > { %p2892_p5 = pnand %p2891_p3, %p2885_p10 }
  0xcd   : > { %2895 = shalt.err (!%p2892_p5)
}
  0xce   : > { %s2896_s30 = scalar_lea.vmem %s3342_s20, 1024  ;;  %s2999_s1 = smov [#allocation7]  }
  0xcf   : > { %p2897_p2 = scmp.ne.s32.totalorder %s3342_s20, %s2896_s30  ;;  %s2901_s22 = sshll.u32 %s2999_s1, 4  ;;  %s2902_s22 = int_to_ptr.vmem [resolvable:$false] %s2901_s22 }
  0xd0   : > { %s2903_s13 = scalar_lea.vmem %s2902_s22, 2048  ;;  %p2904_p13 = scmp.lt.s32.totalorder %s3342_s20, %s2902_s22 }
  0xd1   : > { %p2899_p4 = pnand %p2897_p2, %p3681_p8  ;;  %p2905_p7 = scmp.lt.s32.totalorder %s2903_s13, %s2896_s30 }
  0xd3   : > { %p2900_p11 = pneg %p2899_p4  ;;  %p2906_p9 = por %p2905_p7, %p2904_p13 }
  0xd5   : > { %p2907_p12 = pnand %p2906_p9, %p2900_p11 }
  0xd7   : > { %2910 = shalt.err (!%p2907_p12)
}
  0xd8   : > { %2622 = dma.hbm_to_vmem [thread:$0]  (!%p3682_p0), %s3339_s24, 1024, %s3342_s20, %s3221_s7, %s3677_s26, %s3677_s26, %s3676_s17  }
  0xd9   : > { %p3683_p8 = scmp.ne.s32.totalorder %s3663_s25, 0 }
  0xda   : > { %s3372_s11 = sand.u32 (!%p3683_p8), 1, %s2981_s18   ;;  %p3684_p10 = scmp.ne.s32.totalorder (!%p3683_p8), %s3660_s23, 0 }
  0xdb   : > { %451 = sbr.rel (%p3683_p8) target bundleno = 1529 (0x5f9), region = 64  ;;  %s2225_s28 = sshll.u32 (!%p3683_p8), %s3372_s11, 6 }
  0xdc   : > { %s454_s15 = scalar_lea.sflag (!%p3683_p8), [#allocation3], %s3372_s11  ;;  %s3376_s29 = scalar_lea.vmem (!%p3683_p8), [#allocation2], %s2225_s28 }
  0xe2   : > { %2956 = dma.done.wait (%p3684_p10), %s454_s15, 1024  }
  0xe3   : > { %2958 = vsyncadd (%p3684_p10), %s454_s15, 4294966272  ;;  %s462_s7 = sand.u32 1, %s3084_s21   ;;  %s3383_s27 = scalar_lea.vmem [#allocation5], %s2225_s28 }
  0xe4   : > { %s463_s25 = scalar_lea.sflag [#allocation6], %s462_s7 }
  0xe5   : > { %2960 = dma.done.wait (%p3684_p10), %s463_s25, 2048  }
  0xe6   : > { %2962 = vsyncadd (%p3684_p10), %s463_s25, 4294965248  ;;  %s3389_s17 = scalar_lea.vmem [#allocation7], %s2225_s28  ;;  %p3685_p0 = scmp.eq.s32.totalorder %s3084_s21, 0 }
  0xe8   : > { %2964 = dma.done.wait (%p3685_p0), [#allocation9], 4096   ;;  %p3686_p1 = pmov %p3685_p0 }
  0xe9   : > { %p3687_p6 = pmov %p3685_p0 }
  0xea   : > { %2966 = vsyncadd (%p3686_p1), [#allocation9], 4294963200 }
  0xeb   : > { %2968 = dma.done.wait (%p3687_p6), [#allocation12], 18432   ;;  %p3688_p3 = pmov %p3685_p0 }
  0xec   : > { %v673_v0 = vld [vmem:[#allocation10] sm:$0xff]  ;;  %v674_v1 = vld [vmem:[#allocation10 + $0x8] sm:$0xff]  ;;  %v675_v2 = vld [vmem:[#allocation10 + $0x10] sm:$0xff]  ;;  %vm3001_vm0 = vmmov 0   ;;  %s3689_s20 = sld [smem:[#allocation28_spill]]  ;;  %s3690_s16 = sld [smem:[#allocation30_spill]] }
  0xed   : > { %2970 = vsyncadd (%p3688_p3), [#allocation12], 4294948864  ;;  %v689_v3 = vpack.c.bf16 %v674_v1, %v673_v0  ;;  %v676_v4 = vld [vmem:[#allocation10 + $0x18] sm:$0xff]  ;;  %v577_v5 = vld [vmem:[#allocation8] sm:$0xff]  ;;  %vm1309_vm1 = vcmask 1043456   ;;  %vm1201_vm2 = vcmask 64512  }
  0xee   : > { %v578_v6 = vld [vmem:[#allocation8 + $0x8] sm:$0xff]  ;;  %v690_v7 = vpack.c.bf16 %v676_v4, %v675_v2  ;;  %v677_v9 = vld [vmem:[#allocation10 + $0x20] sm:$0xff]  ;;  %v579_v11 = vld [vmem:[#allocation8 + $0x10] sm:$0xff]  ;;  %s3691_s12 = sld [smem:[#allocation31_spill]]  ;;  %s2232_s30 = sshll.u32 %s3372_s11, 3 }
  0xef   : > { %v593_v8 = vpack.c.bf16 %v578_v6, %v577_v5  ;;  %v678_v10 = vld [vmem:[#allocation10 + $0x28] sm:$0xff]  ;;  %2432 = vmatprep.subr.bf16.mxu1 %v689_v3  ;;  %v580_v12 = vld [vmem:[#allocation8 + $0x18] sm:$0xff]  ;;  %v581_v14 = vld [vmem:[#allocation8 + $0x20] sm:$0xff]  ;;  %s3692_s1 = sld [smem:[#allocation24_spill]]  ;;  %s2246_s22 = sshll.u32 %s3084_s21, 7 }
  0xf0   : > { %2433 = vmatpush3.bf16.msra.mxu1 %v689_v3  ;;  %v594_v13 = vpack.c.bf16 %v580_v12, %v579_v11  ;;  %v582_v15 = vld [vmem:[#allocation8 + $0x28] sm:$0xff]  ;;  %v691_v16 = vpack.c.bf16 %v678_v10, %v677_v9  ;;  %v679_v17 = vld [vmem:[#allocation10 + $0x30] sm:$0xff]  ;;  %v680_v18 = vld [vmem:[#allocation10 + $0x38] sm:$0xff]  ;;  %s539_s13 = scalar_lea.vmem [#allocation14], %s2232_s30  ;;  %s3693_s7 = sld [smem:[#allocation32_spill]] }
  0xf1   : > { %2408 = vmatprep.subr.bf16.mxu0 %v593_v8  ;;  %2434 = vmatprep.subr.bf16.mxu1 %v690_v7  ;;  %v595_v19 = vpack.c.bf16 %v582_v15, %v581_v14  ;;  %v583_v20 = vld [vmem:[#allocation8 + $0x30] sm:$0xff]  ;;  %v584_v21 = vld [vmem:[#allocation8 + $0x38] sm:$0xff]  ;;  %v692_v22 = vpack.c.bf16 %v680_v18, %v679_v17  ;;  %v681_v23 = vld [vmem:[#allocation10 + $0x40] sm:$0xff]  ;;  %s2057_s28 = sshll.u32 %s539_s13, 4  ;;  %s3002_s21 = smov [#allocation14]   ;;  %s3572_s28 = int_to_ptr.vmem [resolvable:$true] %s2057_s28 }
  0xf2   : > { %2409 = vmatpush3.bf16.msra.mxu0 %v593_v8  ;;  %v682_v24 = vld [vmem:[#allocation10 + $0x48] sm:$0xff]  ;;  %v596_v25 = vpack.c.bf16 %v584_v21, %v583_v20  ;;  %v553_v26 = vld [vmem:[%s3383_s27] sm:$0xff]  ;;  %v683_v35 = vld [vmem:[#allocation10 + $0x50] sm:$0xff]  ;;  %v3000_v20 = vmov 0.0   ;;  %s2915_s23 = sshll.u32 %s3002_s21, 4  ;;  %s2916_s23 = int_to_ptr.vmem [resolvable:$false] %s2915_s23 }
  0xf3   : > { %2410 = vmatprep.subr.bf16.mxu0 %v594_v13  ;;  %v554_v27 = vld [vmem:[%s3383_s27 + $0x8] sm:$0xff]  ;;  %v585_v28 = vld [vmem:[#allocation8 + $0x40] sm:$0xff]  ;;  %v693_v33 = vpack.c.bf16 %v682_v24, %v681_v23  ;;  %v684_v36 = vld [vmem:[#allocation10 + $0x58] sm:$0xff]  ;;  %s2917_s26 = scalar_lea.vmem %s2916_s23, 256  ;;  %p2918_p13 = scmp.lt.s32.totalorder %s3572_s28, %s2916_s23 }
  0xf4   : > { %2435 = vmatpush3.bf16.msra.mxu1 %v690_v7  ;;  %v586_v29 = vld [vmem:[#allocation8 + $0x48] sm:$0xff]  ;;  %v561_v30 = vpack.c.bf16 %v554_v27, %v553_v26  ;;  %v541_v31 = vld [vmem:[%s3376_s29] sm:$0xff]  ;;  %v587_v38 = vld [vmem:[#allocation8 + $0x50] sm:$0xff]  ;;  %v694_v40 = vpack.c.bf16 %v684_v36, %v683_v35 }
  0xf5   : > { %2436 = vmatprep.subr.bf16.mxu1 %v691_v16  ;;  %v542_v32 = vld [vmem:[%s3376_s29 + $0x8] sm:$0xff]  ;;  %v597_v37 = vpack.c.bf16 %v586_v29, %v585_v28  ;;  %v588_v39 = vld [vmem:[#allocation8 + $0x58] sm:$0xff]  ;;  %v685_v41 = vld [vmem:[#allocation10 + $0x60] sm:$0xff]  ;;  %p3694_p2 = scmp.ne.s32.totalorder %s3692_s1, 0 }
  0xf6   : > { %2411 = vmatpush3.bf16.msra.mxu0 %v594_v13  ;;  %v549_v34 = vpack.c.bf16 %v542_v32, %v541_v31  ;;  %2448 = vmatprep.mubr.bf16.mxu1 %v561_v30  ;;  %v686_v42 = vld [vmem:[#allocation10 + $0x68] sm:$0xff]  ;;  %v598_v43 = vpack.c.bf16 %v588_v39, %v587_v38  ;;  %v589_v44 = vld [vmem:[#allocation8 + $0x60] sm:$0xff]  ;;  %v687_v47 = vld [vmem:[#allocation10 + $0x70] sm:$0xff]  ;;  %s3570_s25 = scalar_lea.hbm %s3693_s7, %s2246_s22 }
  0xf7   : > { %2412 = vmatprep.subr.bf16.mxu0 %v595_v19  ;;  %v590_v45 = vld [vmem:[#allocation8 + $0x68] sm:$0xff]  ;;  %v695_v46 = vpack.c.bf16 %v686_v42, %v685_v41  ;;  %v688_v48 = vld [vmem:[#allocation10 + $0x78] sm:$0xff]  ;;  %v591_v50 = vld [vmem:[#allocation8 + $0x70] sm:$0xff] }
  0xf8   : > { %2437 = vmatpush3.bf16.msra.mxu1 %v691_v16  ;;  %2424 = vmatprep.mubr.bf16.mxu0 %v549_v34  ;;  %v599_v49 = vpack.c.bf16 %v590_v45, %v589_v44  ;;  %v592_v51 = vld [vmem:[#allocation8 + $0x78] sm:$0xff]  ;;  %v696_v52 = vpack.c.bf16 %v688_v48, %v687_v47  ;;  %v769_v54 = vld [vmem:[#allocation11] sm:$0xff]  ;;  %v770_v55 = vld [vmem:[#allocation11 + $0x8] sm:$0xff] }
  0xf9   : > { %2438 = vmatprep.subr.bf16.mxu1 %v692_v22  ;;  %v600_v53 = vpack.c.bf16 %v592_v51, %v591_v50  ;;  %v555_v56 = vld [vmem:[%s3383_s27 + $0x10] sm:$0xff]  ;;  %v556_v57 = vld [vmem:[%s3383_s27 + $0x18] sm:$0xff]  ;;  %v557_v60 = vld [vmem:[%s3383_s27 + $0x20] sm:$0xff]  ;;  %v785_v0 = vpack.c.bf16 %v770_v55, %v769_v54 }
  0xfa   : > { %2413 = vmatpush3.bf16.msra.mxu0 %v595_v19  ;;  %v543_v58 = vld [vmem:[%s3376_s29 + $0x10] sm:$0xff]  ;;  %v544_v59 = vld [vmem:[%s3376_s29 + $0x18] sm:$0xff]  ;;  %v558_v61 = vld [vmem:[%s3383_s27 + $0x28] sm:$0xff]  ;;  %v562_v1 = vpack.c.bf16 %v556_v57, %v555_v56 }
  0xfb   : > { %2414 = vmatprep.subr.bf16.mxu0 %v596_v25  ;;  %v545_v62 = vld [vmem:[%s3376_s29 + $0x20] sm:$0xff]  ;;  %v546_v63 = vld [vmem:[%s3376_s29 + $0x28] sm:$0xff]  ;;  %v771_v2 = vld [vmem:[#allocation11 + $0x10] sm:$0xff]  ;;  %v550_v4 = vpack.c.bf16 %v544_v59, %v543_v58  ;;  %v563_v5 = vpack.c.bf16 %v558_v61, %v557_v60 }
  0xfc   : > { %2439 = vmatpush3.bf16.msra.mxu1 %v692_v22  ;;  %v772_v3 = vld [vmem:[#allocation11 + $0x18] sm:$0xff]  ;;  %v551_v6 = vpack.c.bf16 %v546_v63, %v545_v62  ;;  %v559_v8 = vld [vmem:[%s3383_s27 + $0x30] sm:$0xff]  ;;  %v773_v14 = vld [vmem:[#allocation11 + $0x20] sm:$0xff] }
  0xfd   : > { %2440 = vmatprep.subr.bf16.mxu1 %v693_v33  ;;  %v786_v7 = vpack.c.bf16 %v772_v3, %v771_v2  ;;  %v560_v9 = vld [vmem:[%s3383_s27 + $0x38] sm:$0xff]  ;;  %v547_v10 = vld [vmem:[%s3376_s29 + $0x30] sm:$0xff]  ;;  %v774_v15 = vld [vmem:[#allocation11 + $0x28] sm:$0xff]  ;;  %s2044_s27 = scalar_lea.sflag [#allocation4], %s3372_s11 }
  0xfe   : > { %2415 = vmatpush3.bf16.msra.mxu0 %v596_v25  ;;  %v548_v11 = vld [vmem:[%s3376_s29 + $0x38] sm:$0xff]  ;;  %v564_v12 = vpack.c.bf16 %v560_v9, %v559_v8  ;;  %v787_v16 = vpack.c.bf16 %v774_v15, %v773_v14  ;;  %v775_v17 = vld [vmem:[#allocation11 + $0x30] sm:$0xff]  ;;  %v777_v21 = vld [vmem:[#allocation11 + $0x40] sm:$0xff] }
  0xff   : > { %2416 = vmatprep.subr.bf16.mxu0 %v597_v37  ;;  %v552_v13 = vpack.c.bf16 %v548_v11, %v547_v10  ;;  %v776_v18 = vld [vmem:[#allocation11 + $0x38] sm:$0xff]  ;;  %v778_v22 = vld [vmem:[#allocation11 + $0x48] sm:$0xff]  ;;  %v779_v24 = vld [vmem:[#allocation11 + $0x50] sm:$0xff] }
 0x100   : > { %2441 = vmatpush3.bf16.msra.mxu1 %v693_v33  ;;  %v788_v19 = vpack.c.bf16 %v776_v18, %v775_v17  ;;  %v789_v23 = vpack.c.bf16 %v778_v22, %v777_v21  ;;  %v780_v25 = vld [vmem:[#allocation11 + $0x58] sm:$0xff]  ;;  %v781_v27 = vld [vmem:[#allocation11 + $0x60] sm:$0xff]  ;;  %v782_v28 = vld [vmem:[#allocation11 + $0x68] sm:$0xff] }
 0x101   : > { %2442 = vmatprep.subr.bf16.mxu1 %v694_v40  ;;  %v790_v26 = vpack.c.bf16 %v780_v25, %v779_v24  ;;  %v783_v29 = vld [vmem:[#allocation11 + $0x70] sm:$0xff]  ;;  %v791_v30 = vpack.c.bf16 %v782_v28, %v781_v27  ;;  %v784_v31 = vld [vmem:[#allocation11 + $0x78] sm:$0xff]  ;;  %v565_v33 = vld [vmem:[%s3389_s17] sm:$0xff] }
 0x102   : > { %2417 = vmatpush3.bf16.msra.mxu0 %v597_v37  ;;  %v792_v32 = vpack.c.bf16 %v784_v31, %v783_v29  ;;  %v566_v34 = vld [vmem:[%s3389_s17 + $0x8] sm:$0xff]  ;;  %v567_v36 = vld [vmem:[%s3389_s17 + $0x10] sm:$0xff]  ;;  %v568_v37 = vld [vmem:[%s3389_s17 + $0x18] sm:$0xff] }
 0x103   : > { %2418 = vmatprep.subr.bf16.mxu0 %v598_v43  ;;  %v573_v35 = vpack.c.bf16 %v566_v34, %v565_v33  ;;  %v574_v38 = vpack.c.bf16 %v568_v37, %v567_v36  ;;  %v569_v39 = vld [vmem:[%s3389_s17 + $0x20] sm:$0xff]  ;;  %v571_v42 = vld [vmem:[%s3389_s17 + $0x30] sm:$0xff] }
 0x104   : > { %2443 = vmatpush3.bf16.msra.mxu1 %v694_v40  ;;  %v570_v40 = vld [vmem:[%s3389_s17 + $0x28] sm:$0xff]  ;;  %v3432_v45 = vld [vmem:[%s3620_s6] ss:$0 sm:$0xff] }
 0x105   : > { %2444 = vmatprep.subr.bf16.mxu1 %v695_v46  ;;  %v575_v41 = vpack.c.bf16 %v570_v40, %v569_v39  ;;  %v3438_v51 = vld [vmem:[%s3689_s20] ss:$0 sm:$0xff] }
 0x106   : > { %2419 = vmatpush3.bf16.msra.mxu0 %v598_v43  ;;  %v572_v43 = vld [vmem:[%s3389_s17 + $0x38] sm:$0xff]  ;;  %v2235_v33 = vld [vmem:[%s3690_s16] ss:$0 sm:$0xff]  ;;  %s2911_s17 = scalar_lea.vmem %s3572_s28, 128 }
 0x107   : > { %2420 = vmatprep.subr.bf16.mxu0 %v599_v49  ;;  %v576_v44 = vpack.c.bf16 %v572_v43, %v571_v42  ;;  %p2912_p5 = scmp.ne.s32.totalorder %s3572_s28, %s2911_s17  ;;  %p2919_p7 = scmp.lt.s32.totalorder %s2917_s26, %s2911_s17 }
 0x108   : > { %2445 = vmatpush3.bf16.msra.mxu1 %v695_v46 }
 0x109   : > { %2446 = vmatprep.subr.bf16.mxu1 %v696_v52  ;;  %p2913_p4 = pnand %p2912_p5, %p3694_p2  ;;  %p2920_p9 = por %p2919_p7, %p2918_p13 }
 0x10a   : > { %2421 = vmatpush3.bf16.msra.mxu0 %v599_v49 }
 0x10b   : > { %2422 = vmatprep.subr.bf16.mxu0 %v600_v53  ;;  %p2914_p11 = pneg %p2913_p4 }
 0x10c   : > { %2447 = vmatpush3.bf16.msra.mxu1 %v696_v52 }
 0x10d   : > { %2480 = vmatprep.subr.bf16.mxu1 %v3000_v20  ;;  %p2921_p12 = pnand %p2920_p9, %p2914_p11 }
 0x10e   : > { %2423 = vmatpush3.bf16.msra.mxu0 %v600_v53 }
 0x10f   : > { %2456 = vmatprep.subr.bf16.mxu0 %v785_v0  ;;  %2449 = vmatmul.mubr.bf16.vlgmr.msra.gmra.mrb[0].mxu1 %v562_v1 }
 0x110   : > { %2452 = vmatprep.mubr.bf16.mxu1 %v563_v5 }
 0x111   : > { %2425 = vmatmul.mubr.bf16.vlgmr.msra.gmra.mrb[0].mxu0 %v550_v4 }
 0x112   : > { %2428 = vmatprep.mubr.bf16.mxu0 %v551_v6  ;;  %2457 = vmatpush3.bf16.msra.mxu0 %v785_v0 }
 0x113   : > { %2458 = vmatprep.subr.bf16.mxu0 %v786_v7 }
 0x116   : > { %2459 = vmatpush3.bf16.msra.mxu0 %v786_v7 }
 0x117   : > { %2453 = vmatmul.mubr.bf16.gmra.mrb[4].mxu1 %v564_v12  ;;  %2460 = vmatprep.subr.bf16.mxu0 %v787_v16 }
 0x118   : > { %2482 = vmatprep.mubr.msk.bf16.mxu1 %vm3001_vm0, %v3000_v20 }
 0x119   : > { %2429 = vmatmul.mubr.bf16.gmra.mrb[4].mxu0 %v552_v13 }
 0x11a   : > { %2461 = vmatpush3.bf16.msra.mxu0 %v787_v16  ;;  %2472 = vmatprep.mubr.bf16.mxu0 %v573_v35 }
 0x11b   : > { %2462 = vmatprep.subr.bf16.mxu0 %v788_v19 }
 0x11e   : > { %2463 = vmatpush3.bf16.msra.mxu0 %v788_v19 }
 0x11f   : > { %2464 = vmatprep.subr.bf16.mxu0 %v789_v23 }
 0x122   : > { %2465 = vmatpush3.bf16.msra.mxu0 %v789_v23 }
 0x123   : > { %2466 = vmatprep.subr.bf16.mxu0 %v790_v26 }
 0x126   : > { %2467 = vmatpush3.bf16.msra.mxu0 %v790_v26 }
 0x127   : > { %2468 = vmatprep.subr.bf16.mxu0 %v791_v30 }
 0x12a   : > { %2469 = vmatpush3.bf16.msra.mxu0 %v791_v30 }
 0x12b   : > { %2470 = vmatprep.subr.bf16.mxu0 %v792_v32 }
 0x12e   : > { %2471 = vmatpush3.bf16.msra.mxu0 %v792_v32 }
 0x12f   : > { %2504 = vmatprep.subr.bf16.mxu0 %v3000_v20 }
 0x131   : > { %2473 = vmatmul.mubr.bf16.vlgmr.msra.gmra.mrb[8].mxu0 %v574_v38 }
 0x132   : > { %2476 = vmatprep.mubr.bf16.mxu0 %v575_v41 }
 0x139   : > { %2477 = vmatmul.mubr.bf16.gmra.mrb[12].mxu0 %v576_v44 }
 0x13a   : > { %2506 = vmatprep.mubr.msk.bf16.mxu0 %vm3001_vm0, %v3000_v20 }
 0x1e2   : > { %v2450_v46 = vpop.f32.mrb[0].mxu1 }
 0x1e3   : > { %v738_v47 = vpop.f32.mrb[1].mxu1  ;;  %v747_v9 = vadd.f32 %v2450_v46, %v3432_v45 }
 0x1e4   : > { %v2426_v48 = vpop.f32.mrb[0].mxu0  ;;  %v739_v49 = vadd.f32 %v3432_v45, %v738_v47  ;;  %v2451_v50 = vpop.f32.mrb[2].mxu1 }
 0x1e5   : > { %v642_v52 = vpop.f32.mrb[1].mxu0  ;;  %v741_v53 = vpop.f32.mrb[3].mxu1  ;;  %v875_v13 = vpack.c.bf16 %v747_v9, %v747_v9  ;;  %v651_v15 = vadd.f32 %v2426_v48, %v3438_v51  ;;  %v750_v17 = vadd.f32 %v2451_v50, %v3432_v45 }
 0x1e6   : > { %v2427_v54 = vpop.f32.mrb[2].mxu0  ;;  %v873_v55 = vpack.c.bf16 %v739_v49, %v739_v49  ;;  %v643_v57 = vadd.f32 %v3438_v51, %v642_v52  ;;  %v742_v58 = vadd.f32 %v3432_v45, %v741_v53 }
 0x1e7   : > { %v645_v56 = vpop.f32.mrb[3].mxu0  ;;  %v867_v18 = vpack.c.bf16 %v651_v15, %v651_v15  ;;  %v876_v21 = vpack.c.bf16 %v750_v17, %v750_v17  ;;  %v654_v23 = vadd.f32 %v2427_v54, %v3438_v51 }
 0x1e8   : > { %2481 = vmatpush3.bf16.xpose.msra.mxu1 %v873_v55  ;;  %v865_v60 = vpack.c.bf16 %v643_v57, %v643_v57  ;;  %v874_v4 = vpack.c.bf16 %v742_v58, %v742_v58  ;;  %v646_v7 = vadd.f32 %v3438_v51, %v645_v56 }
 0x1e9   : > { %2486 = vmatprep.subr.bf16.mxu1 %v3000_v20  ;;  %v868_v25 = vpack.c.bf16 %v654_v23, %v654_v23 }
 0x1ea   : > { %v2454_v59 = vpop.f32.mrb[4].mxu1  ;;  %v866_v11 = vpack.c.bf16 %v646_v7, %v646_v7 }
 0x1eb   : > { %v754_v61 = vpop.f32.mrb[5].mxu1  ;;  %v763_v10 = vadd.f32 %v2454_v59, %v3432_v45 }
 0x1ec   : > { %v2430_v62 = vpop.f32.mrb[4].mxu0  ;;  %v755_v63 = vadd.f32 %v3432_v45, %v754_v61  ;;  %v2455_v0 = vpop.f32.mrb[6].mxu1 }
 0x1ed   : > { %v658_v1 = vpop.f32.mrb[5].mxu0  ;;  %v757_v2 = vpop.f32.mrb[7].mxu1  ;;  %v879_v14 = vpack.c.bf16 %v763_v10, %v763_v10  ;;  %v667_v16 = vadd.f32 %v2430_v62, %v3438_v51  ;;  %v766_v27 = vadd.f32 %v2455_v0, %v3432_v45 }
 0x1ee   : > { %v2431_v3 = vpop.f32.mrb[6].mxu0  ;;  %v877_v5 = vpack.c.bf16 %v755_v63, %v755_v63  ;;  %v659_v8 = vadd.f32 %v3438_v51, %v658_v1  ;;  %v758_v22 = vadd.f32 %v3432_v45, %v757_v2 }
 0x1ef   : > { %v661_v6 = vpop.f32.mrb[7].mxu0  ;;  %2483 = vmatmul.mubr.bf16.vlgmr.msra.gmra.mrb[8].mxu1 %v865_v60  ;;  %v871_v19 = vpack.c.bf16 %v667_v16, %v667_v16  ;;  %v880_v29 = vpack.c.bf16 %v766_v27, %v766_v27  ;;  %v670_v30 = vadd.f32 %v2431_v3, %v3438_v51 }
 0x1f0   : > { %2487 = vmatpush3.bf16.xpose.msra.mxu1 %v874_v4  ;;  %2488 = vmatprep.mubr.msk.bf16.mxu1 %vm3001_vm0, %v3000_v20  ;;  %v869_v12 = vpack.c.bf16 %v659_v8, %v659_v8  ;;  %v878_v24 = vpack.c.bf16 %v758_v22, %v758_v22  ;;  %v662_v26 = vadd.f32 %v3438_v51, %v661_v6 }
 0x1f1   : > { %2492 = vmatprep.subr.bf16.mxu1 %v3000_v20  ;;  %2505 = vmatpush3.bf16.xpose.msra.mxu0 %v877_v5  ;;  %v872_v31 = vpack.c.bf16 %v670_v30, %v670_v30 }
 0x1f2   : > { %2516 = vmatprep.subr.bf16.mxu0 %v3000_v20  ;;  %v870_v28 = vpack.c.bf16 %v662_v26, %v662_v26 }
 0x1f7   : > { %2489 = vmatmul.mubr.bf16.vlgmr.msra.gmra.mrb[12].mxu1 %v866_v11 }
 0x1f8   : > { %2493 = vmatpush3.bf16.xpose.msra.mxu1 %v875_v13  ;;  %2494 = vmatprep.mubr.msk.bf16.mxu1 %vm3001_vm0, %v3000_v20 }
 0x1f9   : > { %2498 = vmatprep.subr.bf16.mxu1 %v3000_v20  ;;  %2507 = vmatmul.mubr.bf16.vlgmr.msra.gmra.mrb[16].mxu0 %v869_v12 }
 0x1fa   : > { %2517 = vmatpush3.bf16.xpose.msra.mxu0 %v879_v14  ;;  %2518 = vmatprep.mubr.msk.bf16.mxu0 %vm3001_vm0, %v3000_v20 }
 0x1fb   : > { %2528 = vmatprep.subr.bf16.mxu0 %v3000_v20 }
 0x1ff   : > { %2495 = vmatmul.mubr.bf16.vlgmr.msra.gmra.mrb[16].mxu1 %v867_v18 }
 0x200   : > { %2499 = vmatpush3.bf16.xpose.msra.mxu1 %v876_v21  ;;  %2500 = vmatprep.mubr.msk.bf16.mxu1 %vm3001_vm0, %v3000_v20 }
 0x201   : > { %2510 = vmatprep.subr.bf16.mxu1 %v3000_v20  ;;  %2519 = vmatmul.mubr.bf16.vlgmr.msra.gmra.mrb[20].mxu0 %v871_v19 }
 0x202   : > { %2530 = vmatprep.mubr.msk.bf16.mxu0 %vm3001_vm0, %v3000_v20 }
 0x204   : > { %v2474_v32 = vpop.f32.mrb[8].mxu0 }
 0x205   : > { %v843_v34 = vadd.f32 %v2474_v32, %v2235_v33  ;;  %v834_v37 = vpop.f32.mrb[9].mxu0 }
 0x206   : > { %v835_v38 = vadd.f32 %v2235_v33, %v834_v37  ;;  %v2475_v39 = vpop.f32.mrb[10].mxu0 }
 0x207   : > { %2501 = vmatmul.mubr.bf16.vlgmr.msra.gmra.mrb[20].mxu1 %v868_v25  ;;  %v1300_v35 = vpack.c.bf16 %v843_v34, %v843_v34  ;;  %v846_v40 = vadd.f32 %v2475_v39, %v2235_v33  ;;  %v837_v41 = vpop.f32.mrb[11].mxu0 }
 0x208   : > { %2511 = vmatpush3.bf16.xpose.msra.mxu1 %v878_v24  ;;  %2512 = vmatprep.mubr.msk.bf16.mxu1 %vm3001_vm0, %v3000_v20  ;;  %v1298_v42 = vpack.c.bf16 %v835_v38, %v835_v38  ;;  %v838_v43 = vadd.f32 %v2235_v33, %v837_v41 }
 0x209   : > { %2522 = vmatprep.subr.bf16.mxu1 %v3000_v20  ;;  %v3483_v36 = vsel %vm1309_vm1, %v1300_v35, 0  ;;  %v1301_v45 = vpack.c.bf16 %v846_v40, %v846_v40 }
 0x20a   : > { %v1311_v48 = vsel %vm1309_vm1, %v1298_v42, 0  ;;  %v1299_v49 = vpack.c.bf16 %v838_v43, %v838_v43 }
 0x20b   : > { %v3487_v52 = vsel %vm1309_vm1, %v1301_v45, 0  ;;  %2529 = vmatpush3.bf16.msra.mxu0 %v1311_v48 }
 0x20c   : > { %v2478_v44 = vpop.f32.mrb[12].mxu0  ;;  %v1357_v56 = vsel %vm1309_vm1, %v1299_v49, 0  ;;  %2540 = vmatprep.subr.bf16.mxu0 %v3000_v20 }
 0x20d   : > { %v859_v46 = vadd.f32 %v2478_v44, %v2235_v33  ;;  %v850_v47 = vpop.f32.mrb[13].mxu0 }
 0x20e   : > { %v851_v50 = vadd.f32 %v2235_v33, %v850_v47  ;;  %v2479_v51 = vpop.f32.mrb[14].mxu0 }
 0x20f   : > { %2513 = vmatmul.mubr.bf16.vlgmr.msra.gmra.mrb[24].mxu1 %v870_v28  ;;  %v1304_v53 = vpack.c.bf16 %v859_v46, %v859_v46  ;;  %v862_v54 = vadd.f32 %v2479_v51, %v2235_v33  ;;  %v853_v55 = vpop.f32.mrb[15].mxu0 }
 0x210   : > { %2523 = vmatpush3.bf16.xpose.msra.mxu1 %v880_v29  ;;  %2524 = vmatprep.mubr.msk.bf16.mxu1 %vm3001_vm0, %v3000_v20  ;;  %v1302_v57 = vpack.c.bf16 %v851_v50, %v851_v50  ;;  %v854_v58 = vadd.f32 %v2235_v33, %v853_v55 }
 0x211   : > { %2534 = vmatprep.subr.bf16.mxu1 %v3000_v20  ;;  %v3492_v59 = vsel %vm1309_vm1, %v1304_v53, 0  ;;  %v1305_v60 = vpack.c.bf16 %v862_v54, %v862_v54 }
 0x212   : > { %v3495_v61 = vsel %vm1309_vm1, %v1302_v57, 0  ;;  %v1303_v62 = vpack.c.bf16 %v854_v58, %v854_v58 }
 0x213   : > { %v3499_v63 = vsel %vm1309_vm1, %v1305_v60, 0 }
 0x214   : > { %v3502_v0 = vsel %vm1309_vm1, %v1303_v62, 0 }
 0x217   : > { %2525 = vmatmul.mubr.bf16.vlgmr.msra.gmra.mrb[28].mxu1 %v872_v31 }
 0x218   : > { %2536 = vmatprep.mubr.msk.bf16.mxu1 %vm3001_vm0, %v3000_v20  ;;  %2535 = vmatpush3.bf16.msra.mxu1 %v1357_v56 }
 0x219   : > { %2546 = vmatprep.subr.bf16.mxu1 %v3000_v20 }
 0x2c2   : > { %v915_v1 = vpop.f32.mrb[8].mxu1 }
 0x2c3   : > { %v2484_v2 = vpop.f32.mrb[9].mxu1  ;;  %v1202_v13 = vsel %vm1201_vm2, %v915_v1, -inf }
 0x2c4   : > { %v918_v3 = vpop.f32.mrb[10].mxu1 }
 0x2c5   : > { %v2485_v4 = vpop.f32.mrb[11].mxu1 }
 0x2ca   : > { %v955_v5 = vpop.f32.mrb[12].mxu1 }
 0x2cb   : > { %v2490_v6 = vpop.f32.mrb[13].mxu1  ;;  %v1205_v7 = vsel %vm1201_vm2, %v955_v5, -inf }
 0x2cc   : > { %1206 = vmax.xlane.f32.xlu0 %v1205_v7  ;;  %v958_v8 = vpop.f32.mrb[14].mxu1  ;;  %v3505_v9 = vpop.f32.mrb[16].mxu0 }
 0x2cd   : > { %v2491_v10 = vpop.f32.mrb[15].mxu1  ;;  %v2508_v11 = vpop.f32.mrb[17].mxu0  ;;  %v1214_v30 = vsel %vm1201_vm2, %v3505_v9, -inf }
 0x2ce   : > { %v1078_v12 = vpop.f32.mrb[18].mxu0 }
 0x2cf   : > { %v2509_v14 = vpop.f32.mrb[19].mxu0 }
 0x2d0   : > { %1203 = vmax.xlane.f32.xlu0 %v1202_v13 }
 0x2d2   : > { %v995_v15 = vpop.f32.mrb[16].mxu1 }
 0x2d3   : > { %v2496_v16 = vpop.f32.mrb[17].mxu1  ;;  %v1208_v29 = vsel %vm1201_vm2, %v995_v15, -inf }
 0x2d4   : > { %v998_v17 = vpop.f32.mrb[18].mxu1  ;;  %v1155_v18 = vpop.f32.mrb[20].mxu0 }
 0x2d5   : > { %v2497_v19 = vpop.f32.mrb[19].mxu1  ;;  %v2520_v21 = vpop.f32.mrb[21].mxu0  ;;  %v1220_v35 = vsel %vm1201_vm2, %v1155_v18, -inf }
 0x2d6   : > { %v1158_v22 = vpop.f32.mrb[22].mxu0 }
 0x2d7   : > { %v2521_v23 = vpop.f32.mrb[23].mxu0 }
 0x2da   : > { %v1035_v24 = vpop.f32.mrb[20].mxu1 }
 0x2db   : > { %v2502_v25 = vpop.f32.mrb[21].mxu1  ;;  %v1211_v26 = vsel %vm1201_vm2, %v1035_v24, -inf }
 0x2dc   : > { %1212 = vmax.xlane.f32.xlu1 %v1211_v26  ;;  %v1038_v27 = vpop.f32.mrb[22].mxu1 }
 0x2dd   : > { %v2503_v28 = vpop.f32.mrb[23].mxu1 }
 0x2e0   : > { %1209 = vmax.xlane.f32.xlu1 %v1208_v29 }
 0x2e2   : > { %v1115_v31 = vpop.f32.mrb[24].mxu1 }
 0x2e3   : > { %v1217_v32 = vsel %vm1201_vm2, %v1115_v31, -inf  ;;  %v2514_v33 = vpop.f32.mrb[25].mxu1 }
 0x2e4   : > { %1215 = vmax.xlane.f32.xlu1 %v1214_v30  ;;  %1218 = vmax.xlane.f32.xlu0 %v1217_v32  ;;  %v1118_v34 = vpop.f32.mrb[26].mxu1 }
 0x2e5   : > { %v2515_v37 = vpop.f32.mrb[27].mxu1 }
 0x2e8   : > { %1221 = vmax.xlane.f32.xlu1 %v1220_v35 }
 0x2ea   : > { %v1195_v38 = vpop.f32.mrb[28].mxu1 }
 0x2eb   : > { %v1223_v39 = vsel %vm1201_vm2, %v1195_v38, -inf  ;;  %v2526_v40 = vpop.f32.mrb[29].mxu1 }
 0x2ec   : > { %1224 = vmax.xlane.f32.xlu0 %v1223_v39  ;;  %v1198_v41 = vpop.f32.mrb[30].mxu1 }
 0x2ed   : > { %v2527_v42 = vpop.f32.mrb[31].mxu1 }
 0x359   : > { %v1207_v43 = vpop.xlane.xlu0 %1206 }
 0x35a   : > { %v1227_v44 = vsub.f32 %v955_v5, %v1207_v43 }
 0x35c   : > { %v1236_v45 = vmul.f32 1.442695, %v1227_v44 }
 0x35d   : > { %v1204_v46 = vpop.xlane.xlu0 %1203 }
 0x35e   : > { %2677 = vpow2.f32 %v1236_v45  ;;  %v1226_v47 = vsub.f32 %v915_v1, %v1204_v46  ;;  %v1731_v46 = vld [vmem:[#allocation13 + $0x180] sm:$0xff] }
 0x360   : > { %v1234_v48 = vmul.f32 1.442695, %v1226_v47  ;;  %v1732_v47 = vld [vmem:[#allocation13 + $0x188] sm:$0xff] }
 0x362   : > { %2679 = vpow2.f32 %v1234_v48 }
 0x368   : > { %v2678_v49 = vpop.eup %2677 }
 0x369   : > { %v1213_v50 = vpop.xlane.xlu1 %1212  ;;  %v1253_v51 = vsel %vm1201_vm2, %v2678_v49, 0.0 }
 0x36a   : > { %v1229_v53 = vsub.f32 %v1035_v24, %v1213_v50  ;;  %1254 = vadd.xlane.f32.xlu0 %v1253_v51  ;;  %v1699_v50 = vld [vmem:[#allocation13 + $0x80] sm:$0xff]  ;;  %v1700_v51 = vld [vmem:[#allocation13 + $0x88] sm:$0xff] }
 0x36c   : > { %v2680_v54 = vpop.eup %2679  ;;  %v1240_v55 = vmul.f32 1.442695, %v1229_v53  ;;  %v1835_v53 = vpack.c.bf16 %v1732_v47, %v1731_v46  ;;  %v1712_v46 = vld [vmem:[#allocation13 + $0xe8] sm:$0xff] }
 0x36d   : > { %v1210_v56 = vpop.xlane.xlu1 %1209  ;;  %v1250_v57 = vsel %vm1201_vm2, %v2680_v54, 0.0 }
 0x36e   : > { %2681 = vpow2.f32 %v1240_v55  ;;  %v1228_v58 = vsub.f32 %v995_v15, %v1210_v56  ;;  %1251 = vadd.xlane.f32.xlu1 %v1250_v57  ;;  %v1715_v57 = vld [vmem:[#allocation13 + $0x100] sm:$0xff] }
 0x370   : > { %v1238_v60 = vmul.f32 1.442695, %v1228_v58  ;;  %v1716_v58 = vld [vmem:[#allocation13 + $0x108] sm:$0xff] }
 0x371   : > { %v1216_v62 = vpop.xlane.xlu1 %1215  ;;  %v1219_v2 = vpop.xlane.xlu0 %1218 }
 0x372   : > { %2683 = vpow2.f32 %v1238_v60  ;;  %v1230_v1 = vsub.f32 %v3505_v9, %v1216_v62  ;;  %v1231_v3 = vsub.f32 %v1115_v31, %v1219_v2  ;;  %v1733_v62 = vld [vmem:[#allocation13 + $0x190] sm:$0xff]  ;;  %v1734_v2 = vld [vmem:[#allocation13 + $0x198] sm:$0xff] }
 0x374   : > { %v1242_v4 = vmul.f32 1.442695, %v1230_v1  ;;  %v1244_v5 = vmul.f32 1.442695, %v1231_v3  ;;  %v1683_v3 = vld [vmem:[#allocation13] sm:$0xff] }
 0x375   : > { %v1222_v6 = vpop.xlane.xlu1 %1221 }
 0x376   : > { %2685 = vpow2.f32 %v1242_v4  ;;  %v1232_v7 = vsub.f32 %v1155_v18, %v1222_v6  ;;  %v1684_v4 = vld [vmem:[#allocation13 + $0x8] sm:$0xff]  ;;  %v1827_v6 = vpack.c.bf16 %v1716_v58, %v1715_v57  ;;  %v1698_v57 = vld [vmem:[#allocation13 + $0x78] sm:$0xff] }
 0x377   : > { %2687 = vpow2.f32 %v1244_v5  ;;  %v1701_v5 = vld [vmem:[#allocation13 + $0x90] sm:$0xff] }
 0x378   : > { %v2682_v8 = vpop.eup %2681  ;;  %v1246_v10 = vmul.f32 1.442695, %v1232_v7  ;;  %v1702_v7 = vld [vmem:[#allocation13 + $0x98] sm:$0xff] }
 0x379   : > { %v1225_v11 = vpop.xlane.xlu0 %1224  ;;  %v1259_v12 = vsel %vm1201_vm2, %v2682_v8, 0.0 }
 0x37a   : > { %2689 = vpow2.f32 %v1246_v10  ;;  %v1233_v13 = vsub.f32 %v1195_v38, %v1225_v11  ;;  %1260 = vadd.xlane.f32.xlu0 %v1259_v12  ;;  %v1717_v10 = vld [vmem:[#allocation13 + $0x110] sm:$0xff]  ;;  %v1718_v11 = vld [vmem:[#allocation13 + $0x118] sm:$0xff]  ;;  %v1735_v12 = vld [vmem:[#allocation13 + $0x1a0] sm:$0xff] }
 0x37c   : > { %v2684_v14 = vpop.eup %2683  ;;  %v1248_v15 = vmul.f32 1.442695, %v1233_v13  ;;  %v1736_v13 = vld [vmem:[#allocation13 + $0x1a8] sm:$0xff] }
 0x37d   : > { %v1256_v16 = vsel %vm1201_vm2, %v2684_v14, 0.0 }
 0x37e   : > { %2691 = vpow2.f32 %v1248_v15  ;;  %1257 = vadd.xlane.f32.xlu1 %v1256_v16  ;;  %v1820_v15 = vpack.c.bf16 %v1702_v7, %v1701_v5  ;;  %v1686_v16 = vld [vmem:[#allocation13 + $0x18] sm:$0xff]  ;;  %v1723_v7 = vld [vmem:[#allocation13 + $0x140] sm:$0xff] }
 0x380   : > { %v2686_v9 = vpop.eup %2685 }
 0x381   : > { %v2688_v17 = vpop.eup %2687  ;;  %v1262_v19 = vsel %vm1201_vm2, %v2686_v9, 0.0 }
 0x382   : > { %1263 = vadd.xlane.f32.xlu1 %v1262_v19  ;;  %v1265_v18 = vsel %vm1201_vm2, %v2688_v17, 0.0  ;;  %v1704_v19 = vld [vmem:[#allocation13 + $0xa8] sm:$0xff] }
 0x383   : > { %1266 = vadd.xlane.f32.xlu0 %v1265_v18  ;;  %v1837_v18 = vpack.c.bf16 %v1736_v13, %v1735_v12  ;;  %v1741_v12 = vld [vmem:[#allocation13 + $0x1d0] sm:$0xff]  ;;  %v1742_v13 = vld [vmem:[#allocation13 + $0x1d8] sm:$0xff] }
 0x384   : > { %v3522_v21 = vpop.eup %2689 }
 0x385   : > { %v1268_v22 = vsel %vm1201_vm2, %v3522_v21, 0.0 }
 0x386   : > { %1269 = vadd.xlane.f32.xlu1 %v1268_v22  ;;  %v1720_v22 = vld [vmem:[#allocation13 + $0x128] sm:$0xff] }
 0x388   : > { %v3526_v23 = vpop.eup %2691 }
 0x389   : > { %v1271_v24 = vsel %vm1201_vm2, %v3526_v23, 0.0 }
 0x38a   : > { %1272 = vadd.xlane.f32.xlu0 %v1271_v24 }
 0x3f7   : > { %v1255_v25 = vpop.xlane.xlu0 %1254 }
 0x3f8   : > { %2693 = vrcp.f32 %v1255_v25  ;;  %v1687_v25 = vld [vmem:[#allocation13 + $0x20] sm:$0xff] }
 0x3fb   : > { %v1252_v26 = vpop.xlane.xlu1 %1251 }
 0x3fc   : > { %2695 = vrcp.f32 %v1252_v26  ;;  %v1688_v26 = vld [vmem:[#allocation13 + $0x28] sm:$0xff] }
 0x402   : > { %v2694_v27 = vpop.eup %2693 }
 0x403   : > { %v1277_v28 = vmul.f32 %v2694_v27, %v2678_v49 }
 0x405   : > { %v1291_v29 = vpack.c.bf16 %v1277_v28, %v1277_v28  ;;  %v1705_v28 = vld [vmem:[#allocation13 + $0xb0] sm:$0xff] }
 0x406   : > { %v2696_v30 = vpop.eup %2695 }
 0x407   : > { %v1275_v31 = vmul.f32 %v2696_v30, %v2680_v54  ;;  %2537 = vmatmul.mubr.msk.bf16.vlgmr.msra.gmra.mrb[32].mxu1 %vm1201_vm2, %v1291_v29  ;;  %v1261_v32 = vpop.xlane.xlu0 %1260  ;;  %v1706_v29 = vld [vmem:[#allocation13 + $0xb8] sm:$0xff]  ;;  %v1813_v30 = vpack.c.bf16 %v1688_v26, %v1687_v25  ;;  %v1729_v25 = vld [vmem:[#allocation13 + $0x170] sm:$0xff] }
 0x408   : > { %2547 = vmatpush3.bf16.msra.mxu1 %v3487_v52  ;;  %2697 = vrcp.f32 %v1261_v32  ;;  %2548 = vmatprep.mubr.msk.bf16.mxu1 %vm3001_vm0, %v3000_v20  ;;  %v1689_v32 = vld [vmem:[#allocation13 + $0x30] sm:$0xff]  ;;  %v1730_v26 = vld [vmem:[#allocation13 + $0x178] sm:$0xff] }
 0x409   : > { %v1290_v33 = vpack.c.bf16 %v1275_v31, %v1275_v31  ;;  %2558 = vmatprep.subr.bf16.mxu1 %v3000_v20  ;;  %v1822_v31 = vpack.c.bf16 %v1706_v29, %v1705_v28  ;;  %v1795_v28 = vld [vmem:[#allocation13 + $0x380] sm:$0xff]  ;;  %v1796_v29 = vld [vmem:[#allocation13 + $0x388] sm:$0xff] }
 0x40b   : > { %2531 = vmatmul.mubr.msk.bf16.vlgmr.msra.gmra.mrb[24].mxu0 %vm1201_vm2, %v1290_v33  ;;  %v1258_v34 = vpop.xlane.xlu1 %1257  ;;  %v1690_v33 = vld [vmem:[#allocation13 + $0x38] sm:$0xff] }
 0x40c   : > { %2541 = vmatpush3.bf16.msra.mxu0 %v3483_v36  ;;  %2699 = vrcp.f32 %v1258_v34  ;;  %2542 = vmatprep.mubr.msk.bf16.mxu0 %vm3001_vm0, %v3000_v20  ;;  %v1707_v34 = vld [vmem:[#allocation13 + $0xc0] sm:$0xff] }
 0x40d   : > { %2552 = vmatprep.subr.bf16.mxu0 %v3000_v20 }
 0x40f   : > { %v1264_v35 = vpop.xlane.xlu1 %1263 }
 0x410   : > { %2701 = vrcp.f32 %v1264_v35  ;;  %v1267_v52 = vpop.xlane.xlu0 %1266  ;;  %v1708_v35 = vld [vmem:[#allocation13 + $0xc8] sm:$0xff] }
 0x411   : > { %2703 = vrcp.f32 %v1267_v52  ;;  %v1814_v52 = vpack.c.bf16 %v1690_v33, %v1689_v32 }
 0x412   : > { %v2698_v37 = vpop.eup %2697 }
 0x413   : > { %v1281_v38 = vmul.f32 %v2698_v37, %v2682_v8  ;;  %v1270_v39 = vpop.xlane.xlu1 %1269  ;;  %v1836_v8 = vpack.c.bf16 %v1734_v2, %v1733_v62  ;;  %v1823_v37 = vpack.c.bf16 %v1708_v35, %v1707_v34  ;;  %v1721_v62 = vld [vmem:[#allocation13 + $0x130] sm:$0xff]  ;;  %v1722_v2 = vld [vmem:[#allocation13 + $0x138] sm:$0xff]  ;;  %v1747_v34 = vld [vmem:[#allocation13 + $0x200] sm:$0xff] }
 0x414   : > { %2705 = vrcp.f32 %v1270_v39  ;;  %v1692_v39 = vld [vmem:[#allocation13 + $0x48] sm:$0xff] }
 0x415   : > { %v1293_v40 = vpack.c.bf16 %v1281_v38, %v1281_v38  ;;  %v1691_v38 = vld [vmem:[#allocation13 + $0x40] sm:$0xff]  ;;  %v1748_v35 = vld [vmem:[#allocation13 + $0x208] sm:$0xff] }
 0x416   : > { %v2700_v41 = vpop.eup %2699 }
 0x417   : > { %v1279_v42 = vmul.f32 %v2700_v41, %v2684_v14  ;;  %2549 = vmatmul.mubr.msk.bf16.vlgmr.msra.gmra.mrb[36].mxu1 %vm1201_vm2, %v1293_v40  ;;  %v1273_v36 = vpop.xlane.xlu0 %1272  ;;  %v1709_v40 = vld [vmem:[#allocation13 + $0xd0] sm:$0xff]  ;;  %v1710_v41 = vld [vmem:[#allocation13 + $0xd8] sm:$0xff] }
 0x418   : > { %2559 = vmatpush3.bf16.msra.mxu1 %v3502_v0  ;;  %2707 = vrcp.f32 %v1273_v36  ;;  %2560 = vmatprep.mubr.msk.bf16.mxu1 %vm3001_vm0, %v3000_v20  ;;  %v1824_v36 = vpack.c.bf16 %v1710_v41, %v1709_v40  ;;  %v1843_v41 = vpack.c.bf16 %v1748_v35, %v1747_v34  ;;  %v1759_v35 = vld [vmem:[#allocation13 + $0x260] sm:$0xff] }
 0x419   : > { %v1292_v43 = vpack.c.bf16 %v1279_v42, %v1279_v42  ;;  %2570 = vmatprep.subr.bf16.mxu1 %v3000_v20  ;;  %v1815_v42 = vpack.c.bf16 %v1692_v39, %v1691_v38  ;;  %v1766_v38 = vld [vmem:[#allocation13 + $0x298] sm:$0xff] }
 0x41a   : > { %v2702_v44 = vpop.eup %2701 }
 0x41b   : > { %v2704_v45 = vpop.eup %2703  ;;  %2543 = vmatmul.mubr.msk.bf16.vlgmr.msra.gmra.mrb[28].mxu0 %vm1201_vm2, %v1292_v43  ;;  %v1283_v0 = vmul.f32 %v2702_v44, %v2686_v9  ;;  %v1703_v9 = vld [vmem:[#allocation13 + $0xa0] sm:$0xff]  ;;  %v1693_v43 = vld [vmem:[#allocation13 + $0x50] sm:$0xff]  ;;  %v1694_v44 = vld [vmem:[#allocation13 + $0x58] sm:$0xff] }
 0x41c   : > { %v1285_v48 = vmul.f32 %v2704_v45, %v2688_v17  ;;  %2553 = vmatpush3.bf16.msra.mxu0 %v3495_v61  ;;  %2554 = vmatprep.mubr.msk.bf16.mxu0 %vm3001_vm0, %v3000_v20  ;;  %v1819_v61 = vpack.c.bf16 %v1700_v51, %v1699_v50  ;;  %v1828_v17 = vpack.c.bf16 %v1718_v11, %v1717_v10  ;;  %v1711_v45 = vld [vmem:[#allocation13 + $0xe0] sm:$0xff]  ;;  %v1713_v51 = vld [vmem:[#allocation13 + $0xf0] sm:$0xff] }
 0x41d   : > { %2564 = vmatprep.subr.bf16.mxu0 %v3000_v20  ;;  %v1294_v55 = vpack.c.bf16 %v1283_v0, %v1283_v0  ;;  %v1821_v24 = vpack.c.bf16 %v1704_v19, %v1703_v9  ;;  %v1816_v47 = vpack.c.bf16 %v1694_v44, %v1693_v43  ;;  %v1695_v0 = vld [vmem:[#allocation13 + $0x60] sm:$0xff]  ;;  %v1744_v9 = vld [vmem:[#allocation13 + $0x1e8] sm:$0xff]  ;;  %v1749_v44 = vld [vmem:[#allocation13 + $0x210] sm:$0xff] }
 0x41e   : > { %v1295_v49 = vpack.c.bf16 %v1285_v48, %v1285_v48  ;;  %v2706_v54 = vpop.eup %2705  ;;  %v1825_v48 = vpack.c.bf16 %v1712_v46, %v1711_v45  ;;  %v1727_v19 = vld [vmem:[#allocation13 + $0x160] sm:$0xff]  ;;  %v1750_v45 = vld [vmem:[#allocation13 + $0x218] sm:$0xff] }
 0x420   : > { %2561 = vmatmul.mubr.msk.bf16.vlgmr.msra.gmra.mrb[40].mxu1 %vm1201_vm2, %v1295_v49  ;;  %v1696_v49 = vld [vmem:[#allocation13 + $0x68] sm:$0xff] }
 0x421   : > { %2571 = vmatpush3.bf16.msra.mxu1 %v3499_v63  ;;  %2572 = vmatprep.mubr.msk.bf16.mxu1 %vm3001_vm0, %v3000_v20  ;;  %v1287_v63 = vmul.f32 %v2706_v54, %v3522_v21  ;;  %v1719_v21 = vld [vmem:[#allocation13 + $0x120] sm:$0xff]  ;;  %v1817_v50 = vpack.c.bf16 %v1696_v49, %v1695_v0  ;;  %v1737_v54 = vld [vmem:[#allocation13 + $0x1b0] sm:$0xff]  ;;  %v1844_v49 = vpack.c.bf16 %v1750_v45, %v1749_v44  ;;  %v1802_v45 = vld [vmem:[#allocation13 + $0x3b8] sm:$0xff] }
 0x422   : > { %v2708_v56 = vpop.eup %2707  ;;  %2342 = vmatprep.subr.bf16.mxu1 %v1835_v53  ;;  %v1829_v27 = vpack.c.bf16 %v1720_v22, %v1719_v21  ;;  %v1714_v53 = vld [vmem:[#allocation13 + $0xf8] sm:$0xff]  ;;  %v1745_v22 = vld [vmem:[#allocation13 + $0x1f0] sm:$0xff] }
 0x423   : > { %v1289_v60 = vmul.f32 %v2708_v56, %v3526_v23  ;;  %2555 = vmatmul.mubr.msk.bf16.vlgmr.msra.gmra.mrb[32].mxu0 %vm1201_vm2, %v1294_v55  ;;  %v1296_v14 = vpack.c.bf16 %v1287_v63, %v1287_v63  ;;  %v1826_v55 = vpack.c.bf16 %v1714_v53, %v1713_v51  ;;  %v1697_v56 = vld [vmem:[#allocation13 + $0x70] sm:$0xff]  ;;  %v1830_v63 = vpack.c.bf16 %v1722_v2, %v1721_v62  ;;  %v1751_v51 = vld [vmem:[#allocation13 + $0x220] sm:$0xff]  ;;  %v1752_v53 = vld [vmem:[#allocation13 + $0x228] sm:$0xff] }
 0x424   : > { %2565 = vmatpush3.bf16.msra.mxu0 %v3492_v59  ;;  %2566 = vmatprep.mubr.msk.bf16.mxu0 %vm3001_vm0, %v3000_v20  ;;  %v1811_v59 = vpack.c.bf16 %v1684_v4, %v1683_v3  ;;  %v1685_v20 = vld [vmem:[#allocation13 + $0x10] sm:$0xff]  ;;  %v1740_v3 = vld [vmem:[#allocation13 + $0x1c8] sm:$0xff]  ;;  %v1763_v4 = vld [vmem:[#allocation13 + $0x280] sm:$0xff] }
 0x425   : > { %v1297_v1 = vpack.c.bf16 %v1289_v60, %v1289_v60  ;;  %2320 = vmatprep.subr.bf16.mxu0 %v1819_v61  ;;  %v1812_v23 = vpack.c.bf16 %v1686_v16, %v1685_v20  ;;  %v1738_v61 = vld [vmem:[#allocation13 + $0x1b8] sm:$0xff]  ;;  %v1818_v60 = vpack.c.bf16 %v1698_v57, %v1697_v56  ;;  %v1743_v16 = vld [vmem:[#allocation13 + $0x1e0] sm:$0xff]  ;;  %v1753_v57 = vld [vmem:[#allocation13 + $0x230] sm:$0xff] }
 0x426   : > { %v1838_v58 = vpack.c.bf16 %v1738_v61, %v1737_v54  ;;  %v1769_v54 = vld [vmem:[#allocation13 + $0x2b0] sm:$0xff]  ;;  %v1845_v61 = vpack.c.bf16 %v1752_v53, %v1751_v51  ;;  %v1772_v62 = vld [vmem:[#allocation13 + $0x2c8] sm:$0xff]  ;;  %v1762_v53 = vld [vmem:[#allocation13 + $0x278] sm:$0xff] }
 0x427   : > { %v1801_v44 = vld [vmem:[#allocation13 + $0x3b0] sm:$0xff] }
 0x428   : > { %2573 = vmatmul.mubr.msk.bf16.vlgmr.msra.gmra.mrb[44].mxu1 %vm1201_vm2, %v1297_v1  ;;  %v1739_v1 = vld [vmem:[#allocation13 + $0x1c0] sm:$0xff]  ;;  %v1761_v51 = vld [vmem:[#allocation13 + $0x270] sm:$0xff] }
 0x429   : > { %2343 = vmatpush3.bf16.msra.mxu1 %v1827_v6  ;;  %v1839_v5 = vpack.c.bf16 %v1740_v3, %v1739_v1  ;;  %v1764_v6 = vld [vmem:[#allocation13 + $0x288] sm:$0xff]  ;;  %v1755_v1 = vld [vmem:[#allocation13 + $0x240] sm:$0xff] }
 0x42a   : > { %2344 = vmatprep.subr.bf16.mxu1 %v1836_v8  ;;  %v1724_v8 = vld [vmem:[#allocation13 + $0x148] sm:$0xff]  ;;  %v1851_v10 = vpack.c.bf16 %v1764_v6, %v1763_v4 }
 0x42b   : > { %2567 = vmatmul.mubr.msk.bf16.vlgmr.msra.gmra.mrb[36].mxu0 %vm1201_vm2, %v1296_v14  ;;  %v1831_v11 = vpack.c.bf16 %v1724_v8, %v1723_v7  ;;  %v1725_v14 = vld [vmem:[#allocation13 + $0x150] sm:$0xff]  ;;  %v1756_v3 = vld [vmem:[#allocation13 + $0x248] sm:$0xff]  ;;  %v1779_v7 = vld [vmem:[#allocation13 + $0x300] sm:$0xff] }
 0x42c   : > { %2321 = vmatpush3.bf16.msra.mxu0 %v1811_v59  ;;  %v1840_v59 = vpack.c.bf16 %v1742_v13, %v1741_v12  ;;  %v1780_v8 = vld [vmem:[#allocation13 + $0x308] sm:$0xff]  ;;  %v1774_v12 = vld [vmem:[#allocation13 + $0x2d8] sm:$0xff]  ;;  %v1797_v13 = vld [vmem:[#allocation13 + $0x390] sm:$0xff] }
 0x42d   : > { %2322 = vmatprep.subr.bf16.mxu0 %v1820_v15  ;;  %2345 = vmatpush3.bf16.msra.mxu1 %v1828_v17  ;;  %v1726_v15 = vld [vmem:[#allocation13 + $0x158] sm:$0xff]  ;;  %v1841_v17 = vpack.c.bf16 %v1744_v9, %v1743_v16  ;;  %v1859_v16 = vpack.c.bf16 %v1780_v8, %v1779_v7  ;;  %v1805_v8 = vld [vmem:[#allocation13 + $0x3d0] sm:$0xff] }
 0x42e   : > { %2346 = vmatprep.subr.bf16.mxu1 %v1837_v18  ;;  %v1832_v20 = vpack.c.bf16 %v1726_v15, %v1725_v14  ;;  %v1728_v18 = vld [vmem:[#allocation13 + $0x168] sm:$0xff] }
 0x42f   : > { %v1833_v21 = vpack.c.bf16 %v1728_v18, %v1727_v19 }
 0x430   : > { %2323 = vmatpush3.bf16.msra.mxu0 %v1812_v23  ;;  %v1746_v23 = vld [vmem:[#allocation13 + $0x1f8] sm:$0xff] }
 0x431   : > { %2324 = vmatprep.subr.bf16.mxu0 %v1821_v24  ;;  %2347 = vmatpush3.bf16.msra.mxu1 %v1829_v27  ;;  %v1842_v24 = vpack.c.bf16 %v1746_v23, %v1745_v22  ;;  %v1834_v27 = vpack.c.bf16 %v1730_v26, %v1729_v25  ;;  %v1758_v22 = vld [vmem:[#allocation13 + $0x258] sm:$0xff]  ;;  %v1781_v23 = vld [vmem:[#allocation13 + $0x310] sm:$0xff]  ;;  %v1775_v26 = vld [vmem:[#allocation13 + $0x2e0] sm:$0xff] }
 0x432   : > { %2348 = vmatprep.subr.bf16.mxu1 %v1838_v58  ;;  %v1754_v58 = vld [vmem:[#allocation13 + $0x238] sm:$0xff] }
 0x433   : > { %v1782_v25 = vld [vmem:[#allocation13 + $0x318] sm:$0xff] }
 0x434   : > { %2325 = vmatpush3.bf16.msra.mxu0 %v1813_v30  ;;  %v1867_v30 = vpack.c.bf16 %v1796_v29, %v1795_v28  ;;  %v1799_v29 = vld [vmem:[#allocation13 + $0x3a0] sm:$0xff] }
 0x435   : > { %2326 = vmatprep.subr.bf16.mxu0 %v1822_v31  ;;  %2349 = vmatpush3.bf16.msra.mxu1 %v1830_v63  ;;  %v1846_v63 = vpack.c.bf16 %v1754_v58, %v1753_v57  ;;  %v1803_v58 = vld [vmem:[#allocation13 + $0x3c0] sm:$0xff] }
 0x436   : > { %2350 = vmatprep.subr.bf16.mxu1 %v1839_v5 }
 0x438   : > { %2327 = vmatpush3.bf16.msra.mxu0 %v1814_v52 }
 0x439   : > { %2328 = vmatprep.subr.bf16.mxu0 %v1823_v37  ;;  %2351 = vmatpush3.bf16.msra.mxu1 %v1831_v11  ;;  %v1765_v37 = vld [vmem:[#allocation13 + $0x290] sm:$0xff] }
 0x43a   : > { %2352 = vmatprep.subr.bf16.mxu1 %v1840_v59  ;;  %v1852_v43 = vpack.c.bf16 %v1766_v38, %v1765_v37  ;;  %v1798_v59 = vld [vmem:[#allocation13 + $0x398] sm:$0xff]  ;;  %v1783_v37 = vld [vmem:[#allocation13 + $0x320] sm:$0xff] }
 0x43b   : > { %v1868_v18 = vpack.c.bf16 %v1798_v59, %v1797_v13 }
 0x43c   : > { %2329 = vmatpush3.bf16.msra.mxu0 %v1815_v42 }
 0x43d   : > { %2330 = vmatprep.subr.bf16.mxu0 %v1824_v36  ;;  %2353 = vmatpush3.bf16.msra.mxu1 %v1832_v20  ;;  %v1847_v20 = vpack.c.bf16 %v1756_v3, %v1755_v1 }
 0x43e   : > { %2354 = vmatprep.subr.bf16.mxu1 %v1841_v17 }
 0x440   : > { %2331 = vmatpush3.bf16.msra.mxu0 %v1816_v47  ;;  %v1767_v47 = vld [vmem:[#allocation13 + $0x2a0] sm:$0xff] }
 0x441   : > { %2332 = vmatprep.subr.bf16.mxu0 %v1825_v48  ;;  %2355 = vmatpush3.bf16.msra.mxu1 %v1833_v21  ;;  %v1768_v48 = vld [vmem:[#allocation13 + $0x2a8] sm:$0xff]  ;;  %v1757_v21 = vld [vmem:[#allocation13 + $0x250] sm:$0xff] }
 0x442   : > { %2356 = vmatprep.subr.bf16.mxu1 %v1842_v24 }
 0x444   : > { %2333 = vmatpush3.bf16.msra.mxu0 %v1817_v50  ;;  %v1853_v50 = vpack.c.bf16 %v1768_v48, %v1767_v47 }
 0x445   : > { %2334 = vmatprep.subr.bf16.mxu0 %v1826_v55  ;;  %2357 = vmatpush3.bf16.msra.mxu1 %v1834_v27  ;;  %v1770_v55 = vld [vmem:[#allocation13 + $0x2b8] sm:$0xff]  ;;  %v1776_v27 = vld [vmem:[#allocation13 + $0x2e8] sm:$0xff] }
 0x446   : > { %2386 = vmatprep.subr.bf16.mxu1 %v1867_v30  ;;  %v1854_v56 = vpack.c.bf16 %v1770_v55, %v1769_v54  ;;  %v1800_v30 = vld [vmem:[#allocation13 + $0x3a8] sm:$0xff]  ;;  %v1857_v34 = vpack.c.bf16 %v1776_v27, %v1775_v26  ;;  %v1870_v55 = vpack.c.bf16 %v1802_v45, %v1801_v44  ;;  %v1810_v26 = vld [vmem:[#allocation13 + $0x3f8] sm:$0xff] }
 0x448   : > { %2335 = vmatpush3.bf16.msra.mxu0 %v1818_v60  ;;  %v1771_v60 = vld [vmem:[#allocation13 + $0x2c0] sm:$0xff] }
 0x449   : > { %2364 = vmatprep.subr.bf16.mxu0 %v1851_v10  ;;  %v1855_v6 = vpack.c.bf16 %v1772_v62, %v1771_v60  ;;  %v1773_v10 = vld [vmem:[#allocation13 + $0x2d0] sm:$0xff]  ;;  %v1804_v60 = vld [vmem:[#allocation13 + $0x3c8] sm:$0xff]  ;;  %v1850_v62 = vpack.c.bf16 %v1762_v53, %v1761_v51 }
 0x44a   : > { %v1856_v19 = vpack.c.bf16 %v1774_v12, %v1773_v10  ;;  %v1806_v10 = vld [vmem:[#allocation13 + $0x3d8] sm:$0xff] }
 0x4da   : > { %v1393_v31 = vpop.f32.mrb[32].mxu1 }
 0x4db   : > { %v1676_v32 = vpack.c.bf16 %v1393_v31, %v1393_v31  ;;  %v2538_v33 = vpop.f32.mrb[33].mxu1  ;;  %v1848_v31 = vpack.c.bf16 %v1758_v22, %v1757_v21 }
 0x4dc   : > { %v1396_v52 = vpop.f32.mrb[34].mxu1  ;;  %v1860_v33 = vpack.c.bf16 %v1782_v25, %v1781_v23  ;;  %v1791_v23 = vld [vmem:[#allocation13 + $0x360] sm:$0xff]  ;;  %v1809_v25 = vld [vmem:[#allocation13 + $0x3f0] sm:$0xff] }
 0x4dd   : > { %v2539_v39 = vpop.f32.mrb[35].mxu1  ;;  %1914 = vmatprep.mubr.bf16.mxu0 %v1676_v32  ;;  %v1760_v52 = vld [vmem:[#allocation13 + $0x268] sm:$0xff] }
 0x4de   : > { %v1347_v40 = vpop.f32.mrb[24].mxu0  ;;  %v1849_v48 = vpack.c.bf16 %v1760_v52, %v1759_v35 }
 0x4df   : > { %v1675_v42 = vpack.c.bf16 %v1347_v40, %v1347_v40  ;;  %v2532_v36 = vpop.f32.mrb[25].mxu0  ;;  %v1869_v40 = vpack.c.bf16 %v1800_v30, %v1799_v29  ;;  %v1793_v29 = vld [vmem:[#allocation13 + $0x370] sm:$0xff]  ;;  %v1794_v30 = vld [vmem:[#allocation13 + $0x378] sm:$0xff] }
 0x4e0   : > { %v1350_v46 = vpop.f32.mrb[26].mxu0  ;;  %v1778_v36 = vld [vmem:[#allocation13 + $0x2f8] sm:$0xff] }
 0x4e1   : > { %v2533_v0 = vpop.f32.mrb[27].mxu0  ;;  %1915 = vmatmul.mubr.bf16.vlgmr.msra.gmra.mrb[40].mxu0 %v1675_v42  ;;  %v1777_v42 = vld [vmem:[#allocation13 + $0x2f0] sm:$0xff] }
 0x4e2   : > { %2365 = vmatpush3.bf16.msra.mxu0 %v1843_v41  ;;  %v1784_v41 = vld [vmem:[#allocation13 + $0x328] sm:$0xff] }
 0x4e3   : > { %2366 = vmatprep.subr.bf16.mxu0 %v1852_v43 }
 0x4e6   : > { %2367 = vmatpush3.bf16.msra.mxu0 %v1844_v49  ;;  %v1861_v49 = vpack.c.bf16 %v1784_v41, %v1783_v37 }
 0x4e7   : > { %2368 = vmatprep.subr.bf16.mxu0 %v1853_v50  ;;  %v1858_v50 = vpack.c.bf16 %v1778_v36, %v1777_v42 }
 0x4ea   : > { %2369 = vmatpush3.bf16.msra.mxu0 %v1845_v61  ;;  %v1485_v2 = vpop.f32.mrb[36].mxu1  ;;  %v1785_v61 = vld [vmem:[#allocation13 + $0x330] sm:$0xff] }
 0x4eb   : > { %v1678_v4 = vpack.c.bf16 %v1485_v2, %v1485_v2  ;;  %v2550_v5 = vpop.f32.mrb[37].mxu1  ;;  %2370 = vmatprep.subr.bf16.mxu0 %v1854_v56  ;;  %v1786_v56 = vld [vmem:[#allocation13 + $0x338] sm:$0xff] }
 0x4ec   : > { %v1488_v11 = vpop.f32.mrb[38].mxu1  ;;  %v1787_v5 = vld [vmem:[#allocation13 + $0x340] sm:$0xff] }
 0x4ed   : > { %v2551_v14 = vpop.f32.mrb[39].mxu1  ;;  %1954 = vmatprep.mubr.bf16.mxu1 %v1678_v4  ;;  %v1871_v4 = vpack.c.bf16 %v1804_v60, %v1803_v58 }
 0x4ee   : > { %2371 = vmatpush3.bf16.msra.mxu0 %v1846_v63  ;;  %v1439_v15 = vpop.f32.mrb[28].mxu0  ;;  %v1862_v63 = vpack.c.bf16 %v1786_v56, %v1785_v61 }
 0x4ef   : > { %v1677_v9 = vpack.c.bf16 %v1439_v15, %v1439_v15  ;;  %v2544_v17 = vpop.f32.mrb[29].mxu0  ;;  %2372 = vmatprep.subr.bf16.mxu0 %v1855_v6  ;;  %v1788_v6 = vld [vmem:[#allocation13 + $0x348] sm:$0xff] }
 0x4f0   : > { %v1442_v24 = vpop.f32.mrb[30].mxu0  ;;  %v1863_v14 = vpack.c.bf16 %v1788_v6, %v1787_v5 }
 0x4f1   : > { %v2545_v28 = vpop.f32.mrb[31].mxu0  ;;  %1955 = vmatmul.mubr.bf16.vlgmr.msra.gmra.mrb[48].mxu1 %v1677_v9  ;;  %v1790_v9 = vld [vmem:[#allocation13 + $0x358] sm:$0xff]  ;;  %v1792_v24 = vld [vmem:[#allocation13 + $0x368] sm:$0xff] }
 0x4f2   : > { %2373 = vmatpush3.bf16.msra.mxu0 %v1847_v20  ;;  %2387 = vmatpush3.bf16.msra.mxu1 %v1859_v16  ;;  %v1872_v20 = vpack.c.bf16 %v1806_v10, %v1805_v8  ;;  %v1789_v16 = vld [vmem:[#allocation13 + $0x350] sm:$0xff]  ;;  %v1865_v27 = vpack.c.bf16 %v1792_v24, %v1791_v23  ;;  %v1874_v28 = vpack.c.bf16 %v1810_v26, %v1809_v25 }
 0x4f3   : > { %v1577_v32 = vpop.f32.mrb[40].mxu1  ;;  %2374 = vmatprep.subr.bf16.mxu0 %v1856_v19  ;;  %2388 = vmatprep.subr.bf16.mxu1 %v1868_v18  ;;  %v1807_v19 = vld [vmem:[#allocation13 + $0x3e0] sm:$0xff]  ;;  %v1808_v18 = vld [vmem:[#allocation13 + $0x3e8] sm:$0xff]  ;;  %v1864_v21 = vpack.c.bf16 %v1790_v9, %v1789_v16 }
 0x4f4   : > { %v1680_v38 = vpack.c.bf16 %v1577_v32, %v1577_v32  ;;  %v2562_v39 = vpop.f32.mrb[41].mxu1  ;;  %v1873_v22 = vpack.c.bf16 %v1808_v18, %v1807_v19 }
 0x4f5   : > { %v1580_v43 = vpop.f32.mrb[42].mxu1 }
 0x4f6   : > { %v2563_v46 = vpop.f32.mrb[43].mxu1  ;;  %2375 = vmatpush3.bf16.msra.mxu0 %v1848_v31  ;;  %1994 = vmatprep.mubr.bf16.mxu0 %v1680_v38  ;;  %v1531_v47 = vpop.f32.mrb[32].mxu0  ;;  %v1866_v31 = vpack.c.bf16 %v1794_v30, %v1793_v29  ;;  %v2244_v38 = vld [vmem:[%s3691_s12] ss:$0 sm:$0xff] }
 0x4f7   : > { %2389 = vmatpush3.bf16.msra.mxu1 %v1860_v33  ;;  %v2556_v0 = vpop.f32.mrb[33].mxu0  ;;  %2376 = vmatprep.subr.bf16.mxu0 %v1857_v34  ;;  %v1679_v13 = vpack.c.bf16 %v1531_v47, %v1531_v47 }
 0x4f8   : > { %v1534_v54 = vpop.f32.mrb[34].mxu0  ;;  %2390 = vmatprep.subr.bf16.mxu1 %v1869_v40 }
 0x4f9   : > { %v2557_v57 = vpop.f32.mrb[35].mxu0 }
 0x4fa   : > { %2377 = vmatpush3.bf16.msra.mxu0 %v1849_v48 }
 0x4fb   : > { %2391 = vmatpush3.bf16.msra.mxu1 %v1861_v49  ;;  %v1669_v2 = vpop.f32.mrb[44].mxu1  ;;  %2378 = vmatprep.subr.bf16.mxu0 %v1858_v50 }
 0x4fc   : > { %v1682_v1 = vpack.c.bf16 %v1669_v2, %v1669_v2  ;;  %v2574_v3 = vpop.f32.mrb[45].mxu1  ;;  %2392 = vmatprep.subr.bf16.mxu1 %v1870_v55 }
 0x4fd   : > { %v1672_v7 = vpop.f32.mrb[46].mxu1 }
 0x4fe   : > { %v2575_v11 = vpop.f32.mrb[47].mxu1  ;;  %2379 = vmatpush3.bf16.msra.mxu0 %v1850_v62  ;;  %2034 = vmatprep.mubr.bf16.mxu1 %v1682_v1  ;;  %v1623_v12 = vpop.f32.mrb[36].mxu0 }
 0x4ff   : > { %2393 = vmatpush3.bf16.msra.mxu1 %v1862_v63  ;;  %v2568_v59 = vpop.f32.mrb[37].mxu0  ;;  %v1681_v32 = vpack.c.bf16 %v1623_v12, %v1623_v12 }
 0x500   : > { %v1626_v15 = vpop.f32.mrb[38].mxu0  ;;  %2394 = vmatprep.subr.bf16.mxu1 %v1871_v4 }
 0x501   : > { %1995 = vmatmul.mubr.bf16.vlgmr.msra.gmra.mrb[44].mxu0 %v1679_v13  ;;  %v2569_v17 = vpop.f32.mrb[39].mxu0 }
 0x503   : > { %2395 = vmatpush3.bf16.msra.mxu1 %v1863_v14 }
 0x504   : > { %2396 = vmatprep.subr.bf16.mxu1 %v1872_v20 }
 0x507   : > { %2397 = vmatpush3.bf16.msra.mxu1 %v1864_v21 }
 0x508   : > { %2398 = vmatprep.subr.bf16.mxu1 %v1873_v22 }
 0x50b   : > { %2399 = vmatpush3.bf16.msra.mxu1 %v1865_v27 }
 0x50c   : > { %2400 = vmatprep.subr.bf16.mxu1 %v1874_v28 }
 0x50f   : > { %2401 = vmatpush3.bf16.msra.mxu1 %v1866_v31 }
 0x512   : > { %2035 = vmatmul.mubr.bf16.vlgmr.msra.gmra.mrb[52].mxu1 %v1681_v32 }
 0x5b4   : > { %v2336_v33 = vpop.f32.mrb[40].mxu0 }
 0x5b5   : > { %v2337_v34 = vpop.f32.mrb[41].mxu0 }
 0x5b6   : > { %v2338_v35 = vadd.f32 %v2337_v34, %v2336_v33  ;;  %v2339_v52 = vpop.f32.mrb[42].mxu0 }
 0x5b7   : > { %v2340_v37 = vpop.f32.mrb[43].mxu0 }
 0x5b8   : > { %v1917_v41 = vadd.f32 %v2338_v35, %v2244_v38 }
 0x5c4   : > { %v2358_v39 = vpop.f32.mrb[48].mxu1 }
 0x5c5   : > { %v2359_v40 = vpop.f32.mrb[49].mxu1 }
 0x5c6   : > { %v2360_v42 = vadd.f32 %v2359_v40, %v2358_v39  ;;  %v2361_v36 = vpop.f32.mrb[50].mxu1 }
 0x5c7   : > { %v2362_v43 = vpop.f32.mrb[51].mxu1 }
 0x5c8   : > { %v1957_v44 = vadd.f32 %v2360_v42, %v1917_v41 }
 0x5d4   : > { %v2380_v45 = vpop.f32.mrb[44].mxu0 }
 0x5d5   : > { %v2381_v46 = vpop.f32.mrb[45].mxu0 }
 0x5d6   : > { %v2382_v47 = vadd.f32 %v2381_v46, %v2380_v45  ;;  %v2383_v48 = vpop.f32.mrb[46].mxu0 }
 0x5d7   : > { %v2384_v0 = vpop.f32.mrb[47].mxu0 }
 0x5d8   : > { %v1997_v49 = vadd.f32 %v2382_v47, %v1957_v44 }
 0x5e5   : > { %v2402_v50 = vpop.f32.mrb[52].mxu1 }
 0x5e6   : > { %v2403_v51 = vpop.f32.mrb[53].mxu1 }
 0x5e7   : > { %v2404_v53 = vadd.f32 %v2403_v51, %v2402_v50  ;;  %v2405_v54 = vpop.f32.mrb[54].mxu1 }
 0x5e8   : > { %v2406_v55 = vpop.f32.mrb[55].mxu1 }
 0x5e9   : > { %v2037_v61 = vadd.f32 %v2404_v53, %v1997_v49 }
 0x5eb   : > { %2042 = vst [vmem:[%s539_s13] sm:$0xff] %v2037_v61 }
 0x5ec   : > { %2924 = shalt.err (!%p2921_p12)
}
 0x5ed   : > { %s2925_s11 = scalar_lea.hbm %s3570_s25, 128  ;;  %s2929_s20 = scalar_lea.hbm %s3693_s7, 256 }
 0x5ee   : > { %p2926_p8 = scmp.ne.s32.totalorder %s3570_s25, %s2925_s11  ;;  %p2930_p1 = scmp.lt.u32.totalorder %s3570_s25, %s3693_s7 }
 0x5ef   : > { %p2931_p6 = scmp.lt.u32.totalorder %s2929_s20, %s2925_s11  ;;  %p2933_p5 = scmp.lt.u32.totalorder %s2925_s11, %s3570_s25 }
 0x5f0   : > { %p2927_p10 = pnand %p2926_p8, %p3694_p2 }
 0x5f1   : > { %p2932_p3 = por %p2931_p6, %p2930_p1 }
 0x5f2   : > { %p2928_p0 = pneg %p2927_p10 }
 0x5f3   : > { %p2934_p4 = por %p2933_p5, %p2932_p3 }
 0x5f5   : > { %p2935_p11 = pnand %p2934_p4, %p2928_p0 }
 0x5f7   : > { %2938 = shalt.err (!%p2935_p11)
}
 0x5f8   : > { %2598 = dma.vmem_to_hbm [thread:$0]  (%p3694_p2), %s3572_s28, 128, %s3570_s25, %s2044_s27  }
 0x5f9 PF: > { %s3695_s16 = sld [smem:[#allocation20_spill]]  ;;  %s3696_s14 = sld [smem:[#allocation22_spill]] }
 0x5fa   : > { %s3697_s8 = sld [smem:[#allocation21_spill]] }
 0x5ff   : > { %s2069_s12 = sand.u32 1, %s3695_s16   ;;  %p3698_p13 = scmp.ne.s32.totalorder %s3696_s14, 0 }
 0x600   : > { %p3699_p7 = scmp.ge.s32.totalorder %s3697_s8, 2  ;;  %s2070_s30 = scalar_lea.sflag [#allocation4], %s2069_s12 }
 0x602   : > { %p2624_p9 = pnand %p3699_p7, %p3698_p13 }
 0x604   : > { %2972 = dma.done.wait (!%p2624_p9), %s2070_s30, 128  }
 0x605   : > { %2974 = vsyncadd (!%p2624_p9), %s2070_s30, 4294967168  ;;  %s3700_s20 = sld [smem:[#allocation23_spill]]  ;;  %s3701_s22 = sld [smem:[#allocation25_spill]] }
 0x606   : > { %s3702_s17 = smov %s2981_s18  ;;  %s3703_s18 = smov %s2985_s19 }
 0x60b   : > { %p29_p12 = scmp.ge.s32.totalorder %s3700_s20, 4   ;;  %s3704_s19 = smov %s3701_s22 }
 0x60d   :  { %31 = sbr.rel (!%p29_p12) target bundleno = 17 (0x11), region = 149 }
 0x614   :  { %2075 = vsyncpa [#allocation3], 1 }
 0x615   :  { %2077 = vsyncpa [#allocation3 + $0x1], 1 }
 0x616   :  { %2078 = vsyncpa [#allocation6], 1 }
 0x617   :  { %2080 = vsyncpa [#allocation6 + $0x1], 1 }
 0x618   :  { %2081 = vsyncpa [#allocation9], 1 }
 0x619   :  { %2082 = vsyncpa [#allocation12], 1 }
 0x61a   :  { %2083 = vsyncpa [#allocation4], 1 }
 0x61b   :  { %2085 = vsyncpa [#allocation4 + $0x1], 1 }

</bundles_post_ra>
